<compile_context>
chip_gen: v7x
topology: tpu7x:2x2x1
jax: 0.10.0
libtpu: 0.0.40
codegen_flags: <defaults>
</compile_context>

<pallas_src>
import jax
import jax.numpy as jnp
import numpy as np
from jax.experimental import pallas as pl
from jax.experimental.pallas import tpu as pltpu

LN_EPS = 1e-5


def make_fpn_kernel(num_levels, scale_factor, t_sizes, out_channel):
    """Builds a kernel that processes all pyramid levels of one batch element."""
    L = num_levels
    sf = scale_factor

    def kernel(lens_ref, *refs):
        x_refs = refs[0:L]                     # per level: (T_i, Cin_i) f32
        w_refs = refs[L:2 * L]                 # per level: (Cin_i, C) bf16 lateral weight
        p_ref = refs[2 * L]                    # (L, 8, C): [b_lat, dw0, dw1, dw2, gamma, beta, 0, 0]
        out_refs = refs[2 * L + 1:3 * L + 1]   # per level: (T_i, C)

        b = pl.program_id(0)
        inv_c = 1.0 / float(out_channel)

        td_up = None
        # coarsest -> finest so the running top-down feature stays on-chip (never hits HBM)
        for i in range(L - 1, -1, -1):
            T = t_sizes[i]
            C = out_channel
            pp = p_ref[i]                                            # (8, C) level params
            n_valid = lens_ref[b, i]                                 # scalar int32 from SMEM
            ridx = jax.lax.broadcasted_iota(jnp.int32, (T, 1), 0)    # row index
            m = (ridx < n_valid).astype(jnp.float32)                 # (T, 1) valid mask

            # --- MaskedConv1D(kernel=1) lateral (ACConv stand-in at the last level):
            #     bf16 x bf16 MXU matmul, f32 accumulation ---
            lat = jnp.dot(x_refs[i][...].astype(jnp.bfloat16), w_refs[i][...],
                          preferred_element_type=jnp.float32)
            lat = (lat + pp[0:1, :]) * m

            # --- top-down pathway: laterals[i] += upsample(laterals[i+1]) (in registers) ---
            td = lat if td_up is None else lat + td_up

            # --- nearest-x2 upsample for the next (finer) level: pure broadcast + reshape
            #     row-interleave (no MXU, no HBM round-trip). Requires T[i-1] == sf*T[i]
            #     (asserted in the wrapper). ---
            if i > 0:
                td_up = jnp.broadcast_to(td[:, None, :], (T, sf, C)).reshape(sf * T, C)

            # --- MaskedConv1D(kernel=3, padding=1, groups=C): XLU rolls + boundary mask ---
            x_prev = jnp.where(ridx > 0, pltpu.roll(td, 1, 0), 0.0)          # td[t-1], 0 at t=0
            x_next = jnp.where(ridx < T - 1, pltpu.roll(td, T - 1, 0), 0.0)  # td[t+1], 0 at t=T-1
            y = (x_prev * pp[1:2, :] + td * pp[2:3, :] + x_next * pp[3:4, :]) * m

            # --- LayerNorm over channels (single-pass statistics), affine ---
            s1 = jnp.sum(y, axis=-1, keepdims=True)
            s2 = jnp.sum(y * y, axis=-1, keepdims=True)
            mu = s1 * inv_c
            var = s2 * inv_c - mu * mu
            out = (y - mu) * jax.lax.rsqrt(var + LN_EPS) * pp[4:5, :] + pp[5:6, :]
            out_refs[i][...] = out.astype(out_refs[i].dtype)

    return kernel


def fpn1d_forward(inputs, fpn_masks, w_lats, p_small, scale_factor=2, out_dtype=jnp.float32):
    """Fused Pallas FPN1D forward.

    inputs[i]:    (B, T_i, Cin_i) channels-last, f32
    fpn_masks[i]: (B, T_i, 1) bool.  NOTE: assumed to be prefix (valid-length) masks,
                  as produced by the ActionFormer/MQ pipeline; compressed to per-
                  (batch, level) lengths (scalar prefetch) and rebuilt in-kernel.
    w_lats[i]:    (Cin_i, C) lateral 1x1 conv weights (last level = ACConv stand-in)
    p_small:      (L, 6, C) packed [b_lat, dw0, dw1, dw2, gamma, beta] per level
    """
    L = len(inputs)
    assert len(fpn_masks) == L and len(w_lats) == L and p_small.shape[0] == L
    sf = int(scale_factor)
    assert sf == scale_factor
    B = inputs[0].shape[0]
    C = int(p_small.shape[-1])
    Ts = [int(x.shape[1]) for x in inputs]
    Cins = [int(x.shape[2]) for x in inputs]
    for i in range(1, L):
        # the reshape-based nearest upsample requires the exact pyramid relation
        assert Ts[i - 1] == sf * Ts[i], "FPN levels must satisfy T[i-1] == scale_factor * T[i]"

    # prefix masks -> per-(batch, level) valid lengths, prefetched into SMEM
    lens = jnp.stack(
        [jnp.sum(m[..., 0].astype(jnp.int32), axis=1) for m in fpn_masks], axis=1
    ).astype(jnp.int32)                                                    # (B, L)

    # resident parameters: bf16 lateral weights + sublane-padded (L, 8, C) slab
    w_bf16 = [w.astype(jnp.bfloat16) for w in w_lats]
    p_pad = jnp.pad(p_small.astype(jnp.float32),
                    ((0, 0), (0, 8 - int(p_small.shape[1])), (0, 0)))      # (L, 8, C)

    in_specs = (
        [pl.BlockSpec((None, Ts[i], Cins[i]), lambda b, lens_ref: (b, 0, 0)) for i in range(L)]
        + [pl.BlockSpec((Cins[i], C), lambda b, lens_ref: (0, 0)) for i in range(L)]
        + [pl.BlockSpec((L, 8, C), lambda b, lens_ref: (0, 0, 0))]
    )
    out_specs = tuple(pl.BlockSpec((None, t, C), lambda b, lens_ref: (b, 0, 0)) for t in Ts)
    out_shape = tuple(jax.ShapeDtypeStruct((B, t, C), out_dtype) for t in Ts)

    # explicit VMEM budget: double-buffered per-level blocks + resident weights + headroom
    out_isize = jnp.dtype(out_dtype).itemsize
    blk_bytes = sum(t * cin * 4 for t, cin in zip(Ts, Cins)) + sum(t * C * out_isize for t in Ts)
    wgt_bytes = sum(cin * C * 2 for cin in Cins) + L * 8 * C * 4
    vmem_limit = int(min(max(4 * blk_bytes + 2 * wgt_bytes, 16 * 1024 * 1024), 64 * 1024 * 1024))

    grid_spec = pltpu.PrefetchScalarGridSpec(
        num_scalar_prefetch=1,
        grid=(B,),
        in_specs=in_specs,
        out_specs=out_specs,
    )

    feats = pl.pallas_call(
        make_fpn_kernel(L, sf, Ts, C),
        grid_spec=grid_spec,
        out_shape=out_shape,
        compiler_params=pltpu.CompilerParams(
            dimension_semantics=("parallel",),   # batch shards across TensorCores (v7x megacore)
            vmem_limit_bytes=vmem_limit,
        ),
    )(lens, *inputs, *w_bf16, p_pad)

    # MaskedConv1D with stride=1 returns the input mask unchanged (as bool).
    new_masks = tuple(m.astype(jnp.bool_) for m in fpn_masks)
    return tuple(feats), new_masks


def init_params(key, in_channels, out_channel):
    """Deterministic synthetic parameters. with_ln=True => lateral / fpn convs have no bias."""
    L = len(in_channels)
    w_lats, p_rows = [], []
    for i in range(L):
        k = jax.random.fold_in(key, i)
        k1, k2, k3, k4, k5 = jax.random.split(k, 5)
        w_lats.append(jax.random.normal(k1, (in_channels[i], out_channel), jnp.float32)
                      / np.sqrt(in_channels[i]))
        if i == L - 1:
            # TODO(synk): ACConv is defined outside the provided module; stand-in here is a
            # masked 1x1 conv (d_in -> d_out) with bias, applied to inputs[-1] as in forward().
            b = 0.1 * jax.random.normal(k2, (out_channel,), jnp.float32)
        else:
            b = jnp.zeros((out_channel,), jnp.float32)
        w_dw = jax.random.normal(k3, (3, out_channel), jnp.float32) / np.sqrt(3.0)
        gamma = 1.0 + 0.1 * jax.random.normal(k4, (out_channel,), jnp.float32)
        beta = 0.1 * jax.random.normal(k5, (out_channel,), jnp.float32)
        p_rows.append(jnp.stack([b, w_dw[0], w_dw[1], w_dw[2], gamma, beta], axis=0))
    return w_lats, jnp.stack(p_rows, axis=0)   # list of (Cin_i, C), (L, 6, C)


def fpn1d_reference(inputs, fpn_masks, w_lats, p_small, scale_factor=2):
    """Plain-JAX reference of the same forward (for verification)."""
    L = len(inputs)
    masks_f = [m.astype(jnp.float32) for m in fpn_masks]
    laterals = []
    for i in range(L):
        lat = jnp.einsum("btc,cd->btd", inputs[i], w_lats[i],
                         precision=jax.lax.Precision.HIGHEST)
        lat = (lat + p_small[i, 0][None, None, :]) * masks_f[i]
        laterals.append(lat)
    for i in range(L - 1, 0, -1):
        laterals[i - 1] = laterals[i - 1] + jnp.repeat(laterals[i], scale_factor, axis=1)
    feats = []
    for i in range(L):
        td = laterals[i]
        padded = jnp.pad(td, ((0, 0), (1, 1), (0, 0)))
        y = (padded[:, :-2, :] * p_small[i, 1]
             + padded[:, 1:-1, :] * p_small[i, 2]
             + padded[:, 2:, :] * p_small[i, 3])
        y = y * masks_f[i]
        mu = jnp.mean(y, axis=-1, keepdims=True)
        r = y - mu
        var = jnp.mean(r * r, axis=-1, keepdims=True)
        out = r * jax.lax.rsqrt(var + LN_EPS) * p_small[i, 4] + p_small[i, 5]
        feats.append(out)
    return feats


if __name__ == "__main__":
    B = 2
    C = 128                      # out_channel; multiple of 128 keeps every store lane-dense
    L = 3                        # number of pyramid levels
    T0 = 32
    Ts = [T0 // (2 ** i) for i in range(L)]   # [32, 16, 8] — all sublane (8) aligned

    key = jax.random.PRNGKey(0)
    k_in, k_par = jax.random.split(key)

    in_keys = jax.random.split(k_in, L)
    inputs = [jax.random.normal(in_keys[i], (B, Ts[i], C), jnp.float32) for i in range(L)]

    # per-level boolean prefix masks from valid lengths (halved per level)
    lengths = jnp.array([T0, (3 * T0) // 4])
    masks = []
    for i in range(L):
        li = jnp.maximum(lengths // (2 ** i), 1)
        t_idx = jnp.arange(Ts[i])[None, :, None]
        masks.append(t_idx < li[:, None, None])          # (B, T_i, 1) bool

    w_lats, p_small = init_params(k_par, [C] * L, C)

    feats, new_masks = fpn1d_forward(inputs, masks, w_lats, p_small)
    feats = jax.block_until_ready(feats)

    ref_feats = fpn1d_reference(inputs, masks, w_lats, p_small)
    # tolerance covers the bf16 MXU lateral conv vs. the HIGHEST-precision f32 reference
    for got, ref in zip(feats, ref_feats):
        np.testing.assert_allclose(np.asarray(got), np.asarray(ref), rtol=5e-2, atol=5e-2)
    for m, nm in zip(masks, new_masks):
        assert bool(jnp.all(m == nm))

    print("KERNEL_OK")
</pallas_src>

<mosaic_0001>
module attributes {stable_mosaic.version = 11 : i64} {
  func.func @kernel(%arg0: i32, %arg1: memref<2x3xi32, #tpu.memory_space<smem>>, %arg2: memref<1x32x128xf32, #tpu.memory_space<vmem>>, %arg3: memref<1x16x128xf32, #tpu.memory_space<vmem>>, %arg4: memref<1x8x128xf32, #tpu.memory_space<vmem>>, %arg5: memref<128x128xbf16, #tpu.memory_space<vmem>>, %arg6: memref<128x128xbf16, #tpu.memory_space<vmem>>, %arg7: memref<128x128xbf16, #tpu.memory_space<vmem>>, %arg8: memref<3x8x128xf32, #tpu.memory_space<vmem>>, %arg9: memref<1x32x128xf32, #tpu.memory_space<vmem>>, %arg10: memref<1x16x128xf32, #tpu.memory_space<vmem>>, %arg11: memref<1x8x128xf32, #tpu.memory_space<vmem>>) attributes {dimension_semantics = [#tpu.dimension_semantics<parallel>], iteration_bounds = array<i64: 2>, scalar_prefetch = 1 : i64, scratch_operands = 0 : i64, tpu.core_type = #tpu.core_type<tc>, window_params = [{transform_indices = @transform_0, window_bounds = array<i64: 1, 32, 128>}, {transform_indices = @transform_1, window_bounds = array<i64: 1, 16, 128>}, {transform_indices = @transform_2, window_bounds = array<i64: 1, 8, 128>}, {pipeline_mode = #tpu.pipeline_mode<synchronous>, transform_indices = @transform_3, window_bounds = array<i64: 128, 128>}, {pipeline_mode = #tpu.pipeline_mode<synchronous>, transform_indices = @transform_4, window_bounds = array<i64: 128, 128>}, {pipeline_mode = #tpu.pipeline_mode<synchronous>, transform_indices = @transform_5, window_bounds = array<i64: 128, 128>}, {pipeline_mode = #tpu.pipeline_mode<synchronous>, transform_indices = @transform_6, window_bounds = array<i64: 3, 8, 128>}, {transform_indices = @transform_7, window_bounds = array<i64: 1, 32, 128>}, {transform_indices = @transform_8, window_bounds = array<i64: 1, 16, 128>}, {transform_indices = @transform_9, window_bounds = array<i64: 1, 8, 128>}]} {
    %c2 = arith.constant 2 : index
    %c0 = arith.constant 0 : index
    %c0_0 = arith.constant 0 : index
    %0 = vector.load %arg8[%c2, %c0, %c0_0] : memref<3x8x128xf32, #tpu.memory_space<vmem>>, vector<1x8x128xf32>
    %1 = vector.shape_cast %0 : vector<1x8x128xf32> to vector<8x128xf32>
    %2 = arith.index_cast %arg0 : i32 to index
    %c2_1 = arith.constant 2 : index
    %3 = memref.load %arg1[%2, %c2_1] : memref<2x3xi32, #tpu.memory_space<smem>>
    %4 = tpu.iota {dimensions = array<i32: 0>} : vector<8x1xi32>
    %5 = vector.broadcast %3 : i32 to vector<8x1xi32>
    %6 = arith.cmpi slt, %4, %5 : vector<8x1xi32>
    %7 = arith.extui %6 : vector<8x1xi1> to vector<8x1xi32>
    %8 = arith.sitofp %7 : vector<8x1xi32> to vector<8x1xf32>
    %c0_2 = arith.constant 0 : index
    %c0_3 = arith.constant 0 : index
    %c0_4 = arith.constant 0 : index
    %9 = vector.load %arg4[%c0_2, %c0_3, %c0_4] : memref<1x8x128xf32, #tpu.memory_space<vmem>>, vector<1x8x128xf32>
    %10 = vector.shape_cast %9 : vector<1x8x128xf32> to vector<8x128xf32>
    %11 = arith.truncf %10 : vector<8x128xf32> to vector<8x128xbf16>
    %c0_5 = arith.constant 0 : index
    %c0_6 = arith.constant 0 : index
    %12 = vector.load %arg7[%c0_5, %c0_6] : memref<128x128xbf16, #tpu.memory_space<vmem>>, vector<128x128xbf16>
    %cst = arith.constant dense<0.000000e+00> : vector<8x128xf32>
    %13 = tpu.matmul %11, %12, %cst {dimension_numbers = #tpu.dot_dimension_numbers<[1], [0], [0], [1], [0, 0, 1, 1], [], []>} : vector<8x128xbf16>, vector<128x128xbf16>, vector<8x128xf32> -> vector<8x128xf32>
    %14 = vector.extract_strided_slice %1 {offsets = [0, 0], sizes = [1, 128], strides = [1, 1]} : vector<8x128xf32> to vector<1x128xf32>
    %15 = vector.broadcast %14 : vector<1x128xf32> to vector<8x128xf32>
    %16 = arith.addf %13, %15 : vector<8x128xf32>
    %17 = vector.broadcast %8 : vector<8x1xf32> to vector<8x128xf32>
    %18 = arith.mulf %16, %17 : vector<8x128xf32>
    %19 = vector.shape_cast %18 : vector<8x128xf32> to vector<8x1x128xf32>
    %20 = vector.shape_cast %19 : vector<8x1x128xf32> to vector<8x1x128xf32>
    %21 = vector.broadcast %20 : vector<8x1x128xf32> to vector<8x2x128xf32>
    %22 = vector.shape_cast %21 : vector<8x2x128xf32> to vector<16x128xf32>
    %c0_i32 = arith.constant 0 : i32
    %23 = vector.broadcast %c0_i32 : i32 to vector<8x1xi32>
    %24 = arith.cmpi sgt, %4, %23 : vector<8x1xi32>
    %c1_i32 = arith.constant 1 : i32
    %25 = tpu.dynamic_rotate %18 by %c1_i32 dim 0 : vector<8x128xf32>, i32 -> vector<8x128xf32>
    %cst_7 = arith.constant 0.000000e+00 : f32
    %26 = vector.shape_cast %24 : vector<8x1xi1> to vector<8x1xi1>
    %27 = vector.broadcast %26 : vector<8x1xi1> to vector<8x128xi1>
    %28 = vector.broadcast %cst_7 : f32 to vector<8x128xf32>
    %29 = arith.select %27, %25, %28 : vector<8x128xi1>, vector<8x128xf32>
    %c7_i32 = arith.constant 7 : i32
    %30 = vector.broadcast %c7_i32 : i32 to vector<8x1xi32>
    %31 = arith.cmpi slt, %4, %30 : vector<8x1xi32>
    %c7_i32_8 = arith.constant 7 : i32
    %32 = tpu.dynamic_rotate %18 by %c7_i32_8 dim 0 : vector<8x128xf32>, i32 -> vector<8x128xf32>
    %cst_9 = arith.constant 0.000000e+00 : f32
    %33 = vector.shape_cast %31 : vector<8x1xi1> to vector<8x1xi1>
    %34 = vector.broadcast %33 : vector<8x1xi1> to vector<8x128xi1>
    %35 = vector.broadcast %cst_9 : f32 to vector<8x128xf32>
    %36 = arith.select %34, %32, %35 : vector<8x128xi1>, vector<8x128xf32>
    %37 = vector.extract_strided_slice %1 {offsets = [1, 0], sizes = [1, 128], strides = [1, 1]} : vector<8x128xf32> to vector<1x128xf32>
    %38 = vector.broadcast %37 : vector<1x128xf32> to vector<8x128xf32>
    %39 = arith.mulf %29, %38 : vector<8x128xf32>
    %40 = vector.extract_strided_slice %1 {offsets = [2, 0], sizes = [1, 128], strides = [1, 1]} : vector<8x128xf32> to vector<1x128xf32>
    %41 = vector.broadcast %40 : vector<1x128xf32> to vector<8x128xf32>
    %42 = arith.mulf %18, %41 : vector<8x128xf32>
    %43 = arith.addf %39, %42 : vector<8x128xf32>
    %44 = vector.extract_strided_slice %1 {offsets = [3, 0], sizes = [1, 128], strides = [1, 1]} : vector<8x128xf32> to vector<1x128xf32>
    %45 = vector.broadcast %44 : vector<1x128xf32> to vector<8x128xf32>
    %46 = arith.mulf %36, %45 : vector<8x128xf32>
    %47 = arith.addf %43, %46 : vector<8x128xf32>
    %48 = vector.broadcast %8 : vector<8x1xf32> to vector<8x128xf32>
    %49 = arith.mulf %47, %48 : vector<8x128xf32>
    %cst_10 = arith.constant dense<0.000000e+00> : vector<8xf32>
    %50 = vector.multi_reduction <add>, %49, %cst_10 [1] : vector<8x128xf32> to vector<8xf32>
    %51 = vector.shape_cast %50 : vector<8xf32> to vector<8x1xf32>
    %52 = arith.mulf %49, %49 : vector<8x128xf32>
    %cst_11 = arith.constant dense<0.000000e+00> : vector<8xf32>
    %53 = vector.multi_reduction <add>, %52, %cst_11 [1] : vector<8x128xf32> to vector<8xf32>
    %54 = vector.shape_cast %53 : vector<8xf32> to vector<8x1xf32>
    %cst_12 = arith.constant 7.812500e-03 : f32
    %55 = vector.broadcast %cst_12 : f32 to vector<8x1xf32>
    %56 = arith.mulf %51, %55 : vector<8x1xf32>
    %cst_13 = arith.constant 7.812500e-03 : f32
    %57 = vector.broadcast %cst_13 : f32 to vector<8x1xf32>
    %58 = arith.mulf %54, %57 : vector<8x1xf32>
    %59 = arith.mulf %56, %56 : vector<8x1xf32>
    %60 = arith.subf %58, %59 : vector<8x1xf32>
    %61 = vector.broadcast %56 : vector<8x1xf32> to vector<8x128xf32>
    %62 = arith.subf %49, %61 : vector<8x128xf32>
    %cst_14 = arith.constant 9.99999974E-6 : f32
    %63 = vector.broadcast %cst_14 : f32 to vector<8x1xf32>
    %64 = arith.addf %60, %63 : vector<8x1xf32>
    %65 = math.rsqrt %64 : vector<8x1xf32>
    %66 = vector.broadcast %65 : vector<8x1xf32> to vector<8x128xf32>
    %67 = arith.mulf %62, %66 : vector<8x128xf32>
    %68 = vector.extract_strided_slice %1 {offsets = [4, 0], sizes = [1, 128], strides = [1, 1]} : vector<8x128xf32> to vector<1x128xf32>
    %69 = vector.broadcast %68 : vector<1x128xf32> to vector<8x128xf32>
    %70 = arith.mulf %67, %69 : vector<8x128xf32>
    %71 = vector.extract_strided_slice %1 {offsets = [5, 0], sizes = [1, 128], strides = [1, 1]} : vector<8x128xf32> to vector<1x128xf32>
    %72 = vector.broadcast %71 : vector<1x128xf32> to vector<8x128xf32>
    %73 = arith.addf %70, %72 : vector<8x128xf32>
    %c0_15 = arith.constant 0 : index
    %c0_16 = arith.constant 0 : index
    %c0_17 = arith.constant 0 : index
    %74 = vector.load %arg11[%c0_15, %c0_16, %c0_17] : memref<1x8x128xf32, #tpu.memory_space<vmem>>, vector<1x8x128xf32>
    %75 = vector.shape_cast %74 : vector<1x8x128xf32> to vector<8x128xf32>
    %76 = vector.shape_cast %73 : vector<8x128xf32> to vector<1x8x128xf32>
    tpu.vector_store %arg11[%c0_15, %c0_16, %c0_17], %76 {strides = array<i32>} : memref<1x8x128xf32, #tpu.memory_space<vmem>>, vector<1x8x128xf32>,
    %c1 = arith.constant 1 : index
    %c0_18 = arith.constant 0 : index
    %c0_19 = arith.constant 0 : index
    %77 = vector.load %arg8[%c1, %c0_18, %c0_19] : memref<3x8x128xf32, #tpu.memory_space<vmem>>, vector<1x8x128xf32>
    %78 = vector.shape_cast %77 : vector<1x8x128xf32> to vector<8x128xf32>
    %79 = arith.index_cast %arg0 : i32 to index
    %c1_20 = arith.constant 1 : index
    %80 = memref.load %arg1[%79, %c1_20] : memref<2x3xi32, #tpu.memory_space<smem>>
    %81 = tpu.iota {dimensions = array<i32: 0>} : vector<16x1xi32>
    %82 = vector.broadcast %80 : i32 to vector<16x1xi32>
    %83 = arith.cmpi slt, %81, %82 : vector<16x1xi32>
    %84 = arith.extui %83 : vector<16x1xi1> to vector<16x1xi32>
    %85 = arith.sitofp %84 : vector<16x1xi32> to vector<16x1xf32>
    %c0_21 = arith.constant 0 : index
    %c0_22 = arith.constant 0 : index
    %c0_23 = arith.constant 0 : index
    %86 = vector.load %arg3[%c0_21, %c0_22, %c0_23] : memref<1x16x128xf32, #tpu.memory_space<vmem>>, vector<1x16x128xf32>
    %87 = vector.shape_cast %86 : vector<1x16x128xf32> to vector<16x128xf32>
    %88 = arith.truncf %87 : vector<16x128xf32> to vector<16x128xbf16>
    %c0_24 = arith.constant 0 : index
    %c0_25 = arith.constant 0 : index
    %89 = vector.load %arg6[%c0_24, %c0_25] : memref<128x128xbf16, #tpu.memory_space<vmem>>, vector<128x128xbf16>
    %cst_26 = arith.constant dense<0.000000e+00> : vector<16x128xf32>
    %90 = tpu.matmul %88, %89, %cst_26 {dimension_numbers = #tpu.dot_dimension_numbers<[1], [0], [0], [1], [0, 0, 1, 1], [], []>} : vector<16x128xbf16>, vector<128x128xbf16>, vector<16x128xf32> -> vector<16x128xf32>
    %91 = vector.extract_strided_slice %78 {offsets = [0, 0], sizes = [1, 128], strides = [1, 1]} : vector<8x128xf32> to vector<1x128xf32>
    %92 = vector.broadcast %91 : vector<1x128xf32> to vector<16x128xf32>
    %93 = arith.addf %90, %92 : vector<16x128xf32>
    %94 = vector.broadcast %85 : vector<16x1xf32> to vector<16x128xf32>
    %95 = arith.mulf %93, %94 : vector<16x128xf32>
    %96 = arith.addf %95, %22 : vector<16x128xf32>
    %97 = vector.shape_cast %96 : vector<16x128xf32> to vector<16x1x128xf32>
    %98 = vector.shape_cast %97 : vector<16x1x128xf32> to vector<16x1x128xf32>
    %99 = vector.broadcast %98 : vector<16x1x128xf32> to vector<16x2x128xf32>
    %100 = vector.shape_cast %99 : vector<16x2x128xf32> to vector<32x128xf32>
    %c0_i32_27 = arith.constant 0 : i32
    %101 = vector.broadcast %c0_i32_27 : i32 to vector<16x1xi32>
    %102 = arith.cmpi sgt, %81, %101 : vector<16x1xi32>
    %c1_i32_28 = arith.constant 1 : i32
    %103 = tpu.dynamic_rotate %96 by %c1_i32_28 dim 0 : vector<16x128xf32>, i32 -> vector<16x128xf32>
    %cst_29 = arith.constant 0.000000e+00 : f32
    %104 = vector.shape_cast %102 : vector<16x1xi1> to vector<16x1xi1>
    %105 = vector.broadcast %104 : vector<16x1xi1> to vector<16x128xi1>
    %106 = vector.broadcast %cst_29 : f32 to vector<16x128xf32>
    %107 = arith.select %105, %103, %106 : vector<16x128xi1>, vector<16x128xf32>
    %c15_i32 = arith.constant 15 : i32
    %108 = vector.broadcast %c15_i32 : i32 to vector<16x1xi32>
    %109 = arith.cmpi slt, %81, %108 : vector<16x1xi32>
    %c15_i32_30 = arith.constant 15 : i32
    %110 = tpu.dynamic_rotate %96 by %c15_i32_30 dim 0 : vector<16x128xf32>, i32 -> vector<16x128xf32>
    %cst_31 = arith.constant 0.000000e+00 : f32
    %111 = vector.shape_cast %109 : vector<16x1xi1> to vector<16x1xi1>
    %112 = vector.broadcast %111 : vector<16x1xi1> to vector<16x128xi1>
    %113 = vector.broadcast %cst_31 : f32 to vector<16x128xf32>
    %114 = arith.select %112, %110, %113 : vector<16x128xi1>, vector<16x128xf32>
    %115 = vector.extract_strided_slice %78 {offsets = [1, 0], sizes = [1, 128], strides = [1, 1]} : vector<8x128xf32> to vector<1x128xf32>
    %116 = vector.broadcast %115 : vector<1x128xf32> to vector<16x128xf32>
    %117 = arith.mulf %107, %116 : vector<16x128xf32>
    %118 = vector.extract_strided_slice %78 {offsets = [2, 0], sizes = [1, 128], strides = [1, 1]} : vector<8x128xf32> to vector<1x128xf32>
    %119 = vector.broadcast %118 : vector<1x128xf32> to vector<16x128xf32>
    %120 = arith.mulf %96, %119 : vector<16x128xf32>
    %121 = arith.addf %117, %120 : vector<16x128xf32>
    %122 = vector.extract_strided_slice %78 {offsets = [3, 0], sizes = [1, 128], strides = [1, 1]} : vector<8x128xf32> to vector<1x128xf32>
    %123 = vector.broadcast %122 : vector<1x128xf32> to vector<16x128xf32>
    %124 = arith.mulf %114, %123 : vector<16x128xf32>
    %125 = arith.addf %121, %124 : vector<16x128xf32>
    %126 = vector.broadcast %85 : vector<16x1xf32> to vector<16x128xf32>
    %127 = arith.mulf %125, %126 : vector<16x128xf32>
    %cst_32 = arith.constant dense<0.000000e+00> : vector<16xf32>
    %128 = vector.multi_reduction <add>, %127, %cst_32 [1] : vector<16x128xf32> to vector<16xf32>
    %129 = vector.shape_cast %128 : vector<16xf32> to vector<16x1xf32>
    %130 = arith.mulf %127, %127 : vector<16x128xf32>
    %cst_33 = arith.constant dense<0.000000e+00> : vector<16xf32>
    %131 = vector.multi_reduction <add>, %130, %cst_33 [1] : vector<16x128xf32> to vector<16xf32>
    %132 = vector.shape_cast %131 : vector<16xf32> to vector<16x1xf32>
    %cst_34 = arith.constant 7.812500e-03 : f32
    %133 = vector.broadcast %cst_34 : f32 to vector<16x1xf32>
    %134 = arith.mulf %129, %133 : vector<16x1xf32>
    %cst_35 = arith.constant 7.812500e-03 : f32
    %135 = vector.broadcast %cst_35 : f32 to vector<16x1xf32>
    %136 = arith.mulf %132, %135 : vector<16x1xf32>
    %137 = arith.mulf %134, %134 : vector<16x1xf32>
    %138 = arith.subf %136, %137 : vector<16x1xf32>
    %139 = vector.broadcast %134 : vector<16x1xf32> to vector<16x128xf32>
    %140 = arith.subf %127, %139 : vector<16x128xf32>
    %cst_36 = arith.constant 9.99999974E-6 : f32
    %141 = vector.broadcast %cst_36 : f32 to vector<16x1xf32>
    %142 = arith.addf %138, %141 : vector<16x1xf32>
    %143 = math.rsqrt %142 : vector<16x1xf32>
    %144 = vector.broadcast %143 : vector<16x1xf32> to vector<16x128xf32>
    %145 = arith.mulf %140, %144 : vector<16x128xf32>
    %146 = vector.extract_strided_slice %78 {offsets = [4, 0], sizes = [1, 128], strides = [1, 1]} : vector<8x128xf32> to vector<1x128xf32>
    %147 = vector.broadcast %146 : vector<1x128xf32> to vector<16x128xf32>
    %148 = arith.mulf %145, %147 : vector<16x128xf32>
    %149 = vector.extract_strided_slice %78 {offsets = [5, 0], sizes = [1, 128], strides = [1, 1]} : vector<8x128xf32> to vector<1x128xf32>
    %150 = vector.broadcast %149 : vector<1x128xf32> to vector<16x128xf32>
    %151 = arith.addf %148, %150 : vector<16x128xf32>
    %c0_37 = arith.constant 0 : index
    %c0_38 = arith.constant 0 : index
    %c0_39 = arith.constant 0 : index
    %152 = vector.load %arg10[%c0_37, %c0_38, %c0_39] : memref<1x16x128xf32, #tpu.memory_space<vmem>>, vector<1x16x128xf32>
    %153 = vector.shape_cast %152 : vector<1x16x128xf32> to vector<16x128xf32>
    %154 = vector.shape_cast %151 : vector<16x128xf32> to vector<1x16x128xf32>
    tpu.vector_store %arg10[%c0_37, %c0_38, %c0_39], %154 {strides = array<i32>} : memref<1x16x128xf32, #tpu.memory_space<vmem>>, vector<1x16x128xf32>,
    %c0_40 = arith.constant 0 : index
    %c0_41 = arith.constant 0 : index
    %c0_42 = arith.constant 0 : index
    %155 = vector.load %arg8[%c0_40, %c0_41, %c0_42] : memref<3x8x128xf32, #tpu.memory_space<vmem>>, vector<1x8x128xf32>
    %156 = vector.shape_cast %155 : vector<1x8x128xf32> to vector<8x128xf32>
    %157 = arith.index_cast %arg0 : i32 to index
    %c0_43 = arith.constant 0 : index
    %158 = memref.load %arg1[%157, %c0_43] : memref<2x3xi32, #tpu.memory_space<smem>>
    %159 = tpu.iota {dimensions = array<i32: 0>} : vector<32x1xi32>
    %160 = vector.broadcast %158 : i32 to vector<32x1xi32>
    %161 = arith.cmpi slt, %159, %160 : vector<32x1xi32>
    %162 = arith.extui %161 : vector<32x1xi1> to vector<32x1xi32>
    %163 = arith.sitofp %162 : vector<32x1xi32> to vector<32x1xf32>
    %c0_44 = arith.constant 0 : index
    %c0_45 = arith.constant 0 : index
    %c0_46 = arith.constant 0 : index
    %164 = vector.load %arg2[%c0_44, %c0_45, %c0_46] : memref<1x32x128xf32, #tpu.memory_space<vmem>>, vector<1x32x128xf32>
    %165 = vector.shape_cast %164 : vector<1x32x128xf32> to vector<32x128xf32>
    %166 = arith.truncf %165 : vector<32x128xf32> to vector<32x128xbf16>
    %c0_47 = arith.constant 0 : index
    %c0_48 = arith.constant 0 : index
    %167 = vector.load %arg5[%c0_47, %c0_48] : memref<128x128xbf16, #tpu.memory_space<vmem>>, vector<128x128xbf16>
    %cst_49 = arith.constant dense<0.000000e+00> : vector<32x128xf32>
    %168 = tpu.matmul %166, %167, %cst_49 {dimension_numbers = #tpu.dot_dimension_numbers<[1], [0], [0], [1], [0, 0, 1, 1], [], []>} : vector<32x128xbf16>, vector<128x128xbf16>, vector<32x128xf32> -> vector<32x128xf32>
    %169 = vector.extract_strided_slice %156 {offsets = [0, 0], sizes = [1, 128], strides = [1, 1]} : vector<8x128xf32> to vector<1x128xf32>
    %170 = vector.broadcast %169 : vector<1x128xf32> to vector<32x128xf32>
    %171 = arith.addf %168, %170 : vector<32x128xf32>
    %172 = vector.broadcast %163 : vector<32x1xf32> to vector<32x128xf32>
    %173 = arith.mulf %171, %172 : vector<32x128xf32>
    %174 = arith.addf %173, %100 : vector<32x128xf32>
    %c0_i32_50 = arith.constant 0 : i32
    %175 = vector.broadcast %c0_i32_50 : i32 to vector<32x1xi32>
    %176 = arith.cmpi sgt, %159, %175 : vector<32x1xi32>
    %c1_i32_51 = arith.constant 1 : i32
    %177 = tpu.dynamic_rotate %174 by %c1_i32_51 dim 0 : vector<32x128xf32>, i32 -> vector<32x128xf32>
    %cst_52 = arith.constant 0.000000e+00 : f32
    %178 = vector.shape_cast %176 : vector<32x1xi1> to vector<32x1xi1>
    %179 = vector.broadcast %178 : vector<32x1xi1> to vector<32x128xi1>
    %180 = vector.broadcast %cst_52 : f32 to vector<32x128xf32>
    %181 = arith.select %179, %177, %180 : vector<32x128xi1>, vector<32x128xf32>
    %c31_i32 = arith.constant 31 : i32
    %182 = vector.broadcast %c31_i32 : i32 to vector<32x1xi32>
    %183 = arith.cmpi slt, %159, %182 : vector<32x1xi32>
    %c31_i32_53 = arith.constant 31 : i32
    %184 = tpu.dynamic_rotate %174 by %c31_i32_53 dim 0 : vector<32x128xf32>, i32 -> vector<32x128xf32>
    %cst_54 = arith.constant 0.000000e+00 : f32
    %185 = vector.shape_cast %183 : vector<32x1xi1> to vector<32x1xi1>
    %186 = vector.broadcast %185 : vector<32x1xi1> to vector<32x128xi1>
    %187 = vector.broadcast %cst_54 : f32 to vector<32x128xf32>
    %188 = arith.select %186, %184, %187 : vector<32x128xi1>, vector<32x128xf32>
    %189 = vector.extract_strided_slice %156 {offsets = [1, 0], sizes = [1, 128], strides = [1, 1]} : vector<8x128xf32> to vector<1x128xf32>
    %190 = vector.broadcast %189 : vector<1x128xf32> to vector<32x128xf32>
    %191 = arith.mulf %181, %190 : vector<32x128xf32>
    %192 = vector.extract_strided_slice %156 {offsets = [2, 0], sizes = [1, 128], strides = [1, 1]} : vector<8x128xf32> to vector<1x128xf32>
    %193 = vector.broadcast %192 : vector<1x128xf32> to vector<32x128xf32>
    %194 = arith.mulf %174, %193 : vector<32x128xf32>
    %195 = arith.addf %191, %194 : vector<32x128xf32>
    %196 = vector.extract_strided_slice %156 {offsets = [3, 0], sizes = [1, 128], strides = [1, 1]} : vector<8x128xf32> to vector<1x128xf32>
    %197 = vector.broadcast %196 : vector<1x128xf32> to vector<32x128xf32>
    %198 = arith.mulf %188, %197 : vector<32x128xf32>
    %199 = arith.addf %195, %198 : vector<32x128xf32>
    %200 = vector.broadcast %163 : vector<32x1xf32> to vector<32x128xf32>
    %201 = arith.mulf %199, %200 : vector<32x128xf32>
    %cst_55 = arith.constant dense<0.000000e+00> : vector<32xf32>
    %202 = vector.multi_reduction <add>, %201, %cst_55 [1] : vector<32x128xf32> to vector<32xf32>
    %203 = vector.shape_cast %202 : vector<32xf32> to vector<32x1xf32>
    %204 = arith.mulf %201, %201 : vector<32x128xf32>
    %cst_56 = arith.constant dense<0.000000e+00> : vector<32xf32>
    %205 = vector.multi_reduction <add>, %204, %cst_56 [1] : vector<32x128xf32> to vector<32xf32>
    %206 = vector.shape_cast %205 : vector<32xf32> to vector<32x1xf32>
    %cst_57 = arith.constant 7.812500e-03 : f32
    %207 = vector.broadcast %cst_57 : f32 to vector<32x1xf32>
    %208 = arith.mulf %203, %207 : vector<32x1xf32>
    %cst_58 = arith.constant 7.812500e-03 : f32
    %209 = vector.broadcast %cst_58 : f32 to vector<32x1xf32>
    %210 = arith.mulf %206, %209 : vector<32x1xf32>
    %211 = arith.mulf %208, %208 : vector<32x1xf32>
    %212 = arith.subf %210, %211 : vector<32x1xf32>
    %213 = vector.broadcast %208 : vector<32x1xf32> to vector<32x128xf32>
    %214 = arith.subf %201, %213 : vector<32x128xf32>
    %cst_59 = arith.constant 9.99999974E-6 : f32
    %215 = vector.broadcast %cst_59 : f32 to vector<32x1xf32>
    %216 = arith.addf %212, %215 : vector<32x1xf32>
    %217 = math.rsqrt %216 : vector<32x1xf32>
    %218 = vector.broadcast %217 : vector<32x1xf32> to vector<32x128xf32>
    %219 = arith.mulf %214, %218 : vector<32x128xf32>
    %220 = vector.extract_strided_slice %156 {offsets = [4, 0], sizes = [1, 128], strides = [1, 1]} : vector<8x128xf32> to vector<1x128xf32>
    %221 = vector.broadcast %220 : vector<1x128xf32> to vector<32x128xf32>
    %222 = arith.mulf %219, %221 : vector<32x128xf32>
    %223 = vector.extract_strided_slice %156 {offsets = [5, 0], sizes = [1, 128], strides = [1, 1]} : vector<8x128xf32> to vector<1x128xf32>
    %224 = vector.broadcast %223 : vector<1x128xf32> to vector<32x128xf32>
    %225 = arith.addf %222, %224 : vector<32x128xf32>
    %c0_60 = arith.constant 0 : index
    %c0_61 = arith.constant 0 : index
    %c0_62 = arith.constant 0 : index
    %226 = vector.load %arg9[%c0_60, %c0_61, %c0_62] : memref<1x32x128xf32, #tpu.memory_space<vmem>>, vector<1x32x128xf32>
    %227 = vector.shape_cast %226 : vector<1x32x128xf32> to vector<32x128xf32>
    %228 = vector.shape_cast %225 : vector<32x128xf32> to vector<1x32x128xf32>
    tpu.vector_store %arg9[%c0_60, %c0_61, %c0_62], %228 {strides = array<i32>} : memref<1x32x128xf32, #tpu.memory_space<vmem>>, vector<1x32x128xf32>,
    return
  }
  func.func @transform_0(%arg0: i32, %arg1: memref<2x3xi32, #tpu.memory_space<smem>>) -> (i32, i32, i32) {
    %c0_i32 = arith.constant 0 : i32
    %c0_i32_0 = arith.constant 0 : i32
    %c0_i32_1 = arith.constant 0 : i32
    return %arg0, %c0_i32, %c0_i32_0 : i32, i32, i32
  }
  func.func @transform_1(%arg0: i32, %arg1: memref<2x3xi32, #tpu.memory_space<smem>>) -> (i32, i32, i32) {
    %c0_i32 = arith.constant 0 : i32
    %c0_i32_0 = arith.constant 0 : i32
    %c0_i32_1 = arith.constant 0 : i32
    return %arg0, %c0_i32, %c0_i32_0 : i32, i32, i32
  }
  func.func @transform_2(%arg0: i32, %arg1: memref<2x3xi32, #tpu.memory_space<smem>>) -> (i32, i32, i32) {
    %c0_i32 = arith.constant 0 : i32
    %c0_i32_0 = arith.constant 0 : i32
    %c0_i32_1 = arith.constant 0 : i32
    return %arg0, %c0_i32, %c0_i32_0 : i32, i32, i32
  }
  func.func @transform_3(%arg0: i32, %arg1: memref<2x3xi32, #tpu.memory_space<smem>>) -> (i32, i32) {
    %c0_i32 = arith.constant 0 : i32
    %c0_i32_0 = arith.constant 0 : i32
    %c0_i32_1 = arith.constant 0 : i32
    return %c0_i32, %c0_i32_0 : i32, i32
  }
  func.func @transform_4(%arg0: i32, %arg1: memref<2x3xi32, #tpu.memory_space<smem>>) -> (i32, i32) {
    %c0_i32 = arith.constant 0 : i32
    %c0_i32_0 = arith.constant 0 : i32
    %c0_i32_1 = arith.constant 0 : i32
    return %c0_i32, %c0_i32_0 : i32, i32
  }
  func.func @transform_5(%arg0: i32, %arg1: memref<2x3xi32, #tpu.memory_space<smem>>) -> (i32, i32) {
    %c0_i32 = arith.constant 0 : i32
    %c0_i32_0 = arith.constant 0 : i32
    %c0_i32_1 = arith.constant 0 : i32
    return %c0_i32, %c0_i32_0 : i32, i32
  }
  func.func @transform_6(%arg0: i32, %arg1: memref<2x3xi32, #tpu.memory_space<smem>>) -> (i32, i32, i32) {
    %c0_i32 = arith.constant 0 : i32
    %c0_i32_0 = arith.constant 0 : i32
    %c0_i32_1 = arith.constant 0 : i32
    %c0_i32_2 = arith.constant 0 : i32
    return %c0_i32, %c0_i32_0, %c0_i32_1 : i32, i32, i32
  }
  func.func @transform_7(%arg0: i32, %arg1: memref<2x3xi32, #tpu.memory_space<smem>>) -> (i32, i32, i32) {
    %c0_i32 = arith.constant 0 : i32
    %c0_i32_0 = arith.constant 0 : i32
    %c0_i32_1 = arith.constant 0 : i32
    return %arg0, %c0_i32, %c0_i32_0 : i32, i32, i32
  }
  func.func @transform_8(%arg0: i32, %arg1: memref<2x3xi32, #tpu.memory_space<smem>>) -> (i32, i32, i32) {
    %c0_i32 = arith.constant 0 : i32
    %c0_i32_0 = arith.constant 0 : i32
    %c0_i32_1 = arith.constant 0 : i32
    return %arg0, %c0_i32, %c0_i32_0 : i32, i32, i32
  }
  func.func @transform_9(%arg0: i32, %arg1: memref<2x3xi32, #tpu.memory_space<smem>>) -> (i32, i32, i32) {
    %c0_i32 = arith.constant 0 : i32
    %c0_i32_0 = arith.constant 0 : i32
    %c0_i32_1 = arith.constant 0 : i32
    return %arg0, %c0_i32, %c0_i32_0 : i32, i32, i32
  }
}

</mosaic_0001>

<bundles_post_ra>
// kernel: tpu_custom_call.1
= control target key start
LH: loop header
LB: loop body
LE: loop exit
PB: predicated region body
PF: predicated region fallthrough
CT: control target
= control target key end

     0   :  { %s3342_s0 = inlined_call_operand.hbm [shape: s32[2,3], index: 0, kind: input, shape index: {}]   ;;  %s3343_s1 = inlined_call_operand.hbm [shape: f32[2,32,128], index: 1, kind: input, shape index: {}]   ;;  %s3344_s2 = inlined_call_operand.hbm [shape: f32[2,16,128], index: 2, kind: input, shape index: {}]   ;;  %s3345_s3 = inlined_call_operand.hbm [shape: f32[2,8,128], index: 3, kind: input, shape index: {}]   ;;  %s3346_s4 = inlined_call_operand.hbm [shape: bf16[128,128], index: 4, kind: input, shape index: {}]   ;;  %s3347_s5 = inlined_call_operand.hbm [shape: bf16[128,128], index: 5, kind: input, shape index: {}]   ;;  %s3348_s6 = inlined_call_operand.hbm [shape: bf16[128,128], index: 6, kind: input, shape index: {}]   ;;  %s3349_s7 = inlined_call_operand.vmem [shape: f32[3,8,128], index: 7, kind: input, shape index: {}]   ;;  %s3350_s8 = inlined_call_operand.hbm [shape: f32[2,32,128], index: 8, kind: output, shape index: {0}]   ;;  %s3351_s9 = inlined_call_operand.hbm [shape: f32[2,16,128], index: 9, kind: output, shape index: {1}]   ;;  %s3352_s10 = inlined_call_operand.hbm [shape: f32[2,8,128], index: 10, kind: output, shape index: {2}]  }
   0x1   :  { %3380 = sst [smem:[#allocation32_spill]] %s3344_s2  ;;  %s2098_s15 = scalar_lea.hbm %s3342_s0, 32 }
   0x2   :  { %3381 = sst [smem:[#allocation33_spill]] %s3346_s4  ;;  %p2099_p0 = scmp.ne.s32.totalorder %s3342_s0, %s2098_s15 }
   0x3   :  { %3382 = sst [smem:[#allocation34_spill]] %s3350_s8  ;;  %p2102_p1 = scmp.lt.u32.totalorder %s2098_s15, %s3342_s0 }
   0x4   :  { %3383 = sst [smem:[#allocation35_spill]] %s3351_s9 }
   0x5   :  { %3384 = sst [smem:[#allocation36_spill]] %s3352_s10  ;;  %p2104_p2 = pnand %p2102_p1, %p2099_p0 }
   0x7   :  { %2107 = shalt.err (!%p2104_p2)  }
   0x8   :  { %s2424_s20 = smov [#allocation3]  }
   0x9   :  { %17 = dma.hbm_to_smem %s3342_s0, 32, %s2424_s20, [#allocation2] }
   0xa   :  { %2382 = dma.done.wait [#allocation2], 32 }
   0xb   :  { %2383 = vsyncadd [#allocation2], 4294967264 }
   0xc   :  { %19 = sfence }
   0xd   :  { %20 = vsyncpa [#allocation5], 0 }
   0xe   :  { %22 = vsyncpa [#allocation5 + $0x1], 0 }
   0xf   :  { %23 = vsyncpa [#allocation8], 0 }
  0x10   :  { %25 = vsyncpa [#allocation8 + $0x1], 0 }
  0x11   :  { %26 = vsyncpa [#allocation11], 0 }
  0x12   :  { %27 = vsyncpa [#allocation14], 0 }
  0x13   :  { %28 = vsyncpa [#allocation6], 0 }
  0x14   :  { %30 = vsyncpa [#allocation6 + $0x1], 0 }
  0x15   :  { %31 = vsyncpa [#allocation17], 0 }
  0x16   :  { %33 = vsyncpa [#allocation17 + $0x1], 0  ;;  %s2511_s23 = smov 0   ;;  %s2513_s24 = smov 0  }
  0x17   :  { %s2515_s25 = smov 0   ;;  %s2517_s0 = smov 0  }
  0x18 LB: > { %3385 = sst [smem:[#allocation26_spill]] %s2410_s23  ;;  %s2532_s26 = sadd.s32 4294967295, %s2422_s0   ;;  %s2422_s0 = sphi %s2517_s0, %s3431_s0   ;;  %s2418_s25 = sphi %s2515_s25, %s3433_s25   ;;  %s2414_s24 = sphi %s2513_s24, %s3435_s24   ;;  %s2410_s23 = sphi %s2511_s23, %s3434_s23  }
  0x19   : > { %3386 = sst [smem:[#allocation27_spill]] %s2418_s25  ;;  %s3353_s27 = sadd.s32 4294967294, %s2422_s0  }
  0x1a   : > { %s2536_s28 = sadd.s32 1, %s2422_s0   ;;  %s46_s29 = sadd.s32 1, %s2418_s25 }
  0x1b   : > { %3387 = sst [smem:[#allocation28_spill]] %s2536_s28  ;;  %s43_s30 = ssub.s32 %s2422_s0, %s2536_s28 }
  0x1c   : > { %p53_p3 = scmp.ne.s32.totalorder %s2418_s25, %s2414_s24  ;;  %p44_p4 = scmp.eq.s32.totalorder %s43_s30, 0 }
  0x1d   : > { %p54_p5 = scmp.eq.s32.totalorder %s2422_s0, 0  ;;  %p59_p6 = scmp.ne.s32.totalorder %s2414_s24, %s2410_s23 }
  0x1e   : > { %p3355_p7 = scmp.eq.s32.totalorder %s2532_s26, 0  ;;  %p219_p10 = scmp.eq.s32.totalorder %s2532_s26, 1 }
  0x1f   : > { %s2548_s11 = scalar_select %p44_p4, %s2418_s25, %s46_s29  }
  0x20   : > { %p2550_p8 = por %p54_p5, %p53_p3  ;;  %p2556_p9 = por %p3355_p7, %p59_p6 }
  0x21   : > { %3388 = sst [smem:[#allocation29_spill]] %s2548_s11  ;;  %p225_p11 = scmp.eq.s32.totalorder %s3353_s27, 1 }
  0x22   : > { %s3389_s12 = scalar_select %p2550_p8, 1, 0 }
  0x23   : > { %s3390_s13 = scalar_select %p2556_p9, 1, 0 }
  0x24   : > { %p1793_p12 = scmp.ge.s32.totalorder %s2422_s0, 1  ;;  %p284_p13 = scmp.lt.s32.totalorder %s2422_s0, 3 }
  0x25   : > { %p2565_p0 = por %p219_p10, %p53_p3  ;;  %p2569_p1 = por %p225_p11, %p59_p6 }
  0x26   : > { %p2573_p2 = pnand %p1793_p12, %p284_p13  ;;  %s2425_s17 = smov [#allocation10]  }
  0x27   : > { %s3391_s14 = scalar_select %p2565_p0, 1, 0 }
  0x28   : > { %s3393_s15 = scalar_select %p2569_p1, 1, 0 }
  0x29   : > { %3392 = sst [smem:[#allocation30_spill]] %s3391_s14  ;;  %p1976_p4 = pneg %p2573_p2 }
  0x2a   : > { %3394 = sst [smem:[#allocation31_spill]] %s3393_s15  ;;  %s296_s18 = sshll.u32 %s2425_s17, 4  ;;  %s297_s18 = int_to_ptr.vmem [resolvable:$true] %s296_s18 }
  0x2b   : > { %s3395_s16 = scalar_select %p2573_p2, 1, 0 }
  0x2c   : > { %p2581_p5 = pnand %p1976_p4, %p3355_p7  ;;  %s2588_s20 = sand.u32 1, %s2418_s25  }
  0x2d   : > { %s3397_s4 = sld [smem:[#allocation33_spill]] }
  0x2e   : > { %s3396_s19 = scalar_select %p2581_p5, 1, 0 }
  0x2f   : > { %p2598_p11 = pneg %p2581_p5 }
  0x31   : > { %s3398_s17 = scalar_select %p2598_p11, 1, 0 }
  0x33   : > { %s2108_s29 = scalar_lea.hbm %s3397_s4, 1024 }
  0x34   : > { %p2109_p10 = scmp.ne.s32.totalorder %s3397_s4, %s2108_s29  ;;  %p2115_p4 = scmp.lt.u32.totalorder %s2108_s29, %s3397_s4 }
  0x36   : > { %p2111_p12 = pnand %p2598_p11, %p2109_p10 }
  0x38   : > { %p2112_p13 = pneg %p2111_p12 }
  0x3a   : > { %p2117_p3 = pnand %p2115_p4, %p2112_p13 }
  0x3c   : > { %2120 = shalt.err (!%p2117_p3)
}
  0x3d   : > { %s2121_s21 = scalar_lea.vmem %s297_s18, 1024  ;;  %p2129_p0 = scmp.lt.s32.totalorder %s297_s18, %s297_s18 }
  0x3e   : > { %p2122_p7 = scmp.ne.s32.totalorder %s297_s18, %s2121_s21  ;;  %p2130_p9 = scmp.lt.s32.totalorder %s2121_s21, %s2121_s21 }
  0x40   : > { %p2124_p6 = pnand %p2122_p7, %p2598_p11  ;;  %p2131_p2 = por %p2130_p9, %p2129_p0 }
  0x42   : > { %p2125_p1 = pneg %p2124_p6 }
  0x44   : > { %p2132_p8 = pnand %p2131_p2, %p2125_p1 }
  0x46   : > { %2135 = shalt.err (!%p2132_p8)
}
  0x47   : > { %s3364_s27 = smov 64   ;;  %s3370_s25 = smov 4  }
  0x48   : > { %1979 = dma.hbm_to_vmem [thread:$0]  (!%p2581_p5), %s3397_s4, 1024, %s297_s18, [#allocation11], %s3364_s27, %s3364_s27, %s3370_s25  }
  0x49   : > { %p3399_p7 = scmp.ne.s32.totalorder %s3389_s12, 0  ;;  %p3400_p9 = scmp.lt.s32.totalorder %s2422_s0, 2 }
  0x4a   : > { %s360_s30 = sand.u32 1, %s2422_s0   ;;  %s1801_s21 = sshll.u32 %s2588_s20, 4 }
  0x4b   : > { %p2621_p0 = pnand %p3400_p9, %p3399_p7  ;;  %s1861_s28 = sshll.u32 %s2422_s0, 8 }
  0x4c   : > { %s3402_s2 = sld [smem:[#allocation32_spill]]  ;;  %s364_s18 = scalar_lea.vmem [#allocation7], %s1801_s21 }
  0x4d   : > { %s3401_s29 = scalar_select %p2621_p0, 1, 0 }
  0x4e   : > { %s371_s12 = sshll.u32 %s364_s18, 4  ;;  %s2635_s11 = scalar_lea.sflag [#allocation8], %s360_s30  ;;  %s2633_s12 = int_to_ptr.vmem [resolvable:$true] %s371_s12 }
  0x4f   : > { %p2641_p1 = pneg %p2621_p0 }
  0x51   : > { %s3403_s27 = scalar_select %p2641_p1, 1, 0 }
  0x52   : > { %s2631_s8 = scalar_lea.hbm %s3402_s2, %s1861_s28  ;;  %s2141_s15 = scalar_lea.hbm %s3402_s2, 512 }
  0x53   : > { %s2136_s22 = scalar_lea.hbm %s2631_s8, 256  ;;  %p2142_p6 = scmp.lt.u32.totalorder %s2631_s8, %s3402_s2 }
  0x54   : > { %p2137_p8 = scmp.ne.s32.totalorder %s2631_s8, %s2136_s22  ;;  %p2143_p10 = scmp.lt.u32.totalorder %s2141_s15, %s2136_s22 }
  0x55   : > { %p2145_p13 = scmp.lt.u32.totalorder %s2136_s22, %s2631_s8 }
  0x56   : > { %p2139_p2 = pnand %p2641_p1, %p2137_p8  ;;  %p2144_p12 = por %p2143_p10, %p2142_p6 }
  0x58   : > { %p2140_p3 = pneg %p2139_p2  ;;  %p2146_p4 = por %p2145_p13, %p2144_p12 }
  0x5a   : > { %p2147_p7 = pnand %p2146_p4, %p2140_p3 }
  0x5c   : > { %2150 = shalt.err (!%p2147_p7)
}
  0x5d   : > { %s2151_s30 = scalar_lea.vmem %s2633_s12, 256  ;;  %s2428_s23 = smov [#allocation7]  }
  0x5e   : > { %p2152_p9 = scmp.ne.s32.totalorder %s2633_s12, %s2151_s30  ;;  %s2156_s28 = sshll.u32 %s2428_s23, 4  ;;  %s2157_s28 = int_to_ptr.vmem [resolvable:$false] %s2156_s28 }
  0x5f   : > { %s2158_s21 = scalar_lea.vmem %s2157_s28, 512  ;;  %p2159_p5 = scmp.lt.s32.totalorder %s2633_s12, %s2157_s28 }
  0x60   : > { %p2154_p8 = pnand %p2152_p9, %p2641_p1  ;;  %p2160_p11 = scmp.lt.s32.totalorder %s2158_s21, %s2151_s30 }
  0x62   : > { %p2155_p2 = pneg %p2154_p8  ;;  %p2161_p6 = por %p2160_p11, %p2159_p5 }
  0x64   : > { %p2162_p10 = pnand %p2161_p6, %p2155_p2 }
  0x66   : > { %2165 = shalt.err (!%p2162_p10)
}
  0x67   : > { %s2429_s22 = smov 128   ;;  %s2430_s15 = smov 8  }
  0x68   : > { %1992 = dma.hbm_to_vmem [thread:$0]  (!%p2621_p0), %s2631_s8, 256, %s2633_s12, %s2635_s11, %s2429_s22, %s2429_s22, %s2430_s15  }
  0x69   : > { %s2431_s18 = smov [#allocation12]   ;;  %s2432_s28 = smov [#allocation13]  }
  0x6a   : > { %s309_s23 = sshll.u32 %s2431_s18, 4  ;;  %s322_s30 = sshll.u32 %s2432_s28, 4  ;;  %s310_s23 = int_to_ptr.vmem [resolvable:$true] %s309_s23  ;;  %s323_s30 = int_to_ptr.vmem [resolvable:$true] %s322_s30 }
  0x6b   : > { %s2166_s2 = scalar_lea.hbm %s3347_s5, 1024  ;;  %p3404_p11 = scmp.ne.s32.totalorder %s3398_s17, 0 }
  0x6c   : > { %p2167_p5 = scmp.ne.s32.totalorder %s3347_s5, %s2166_s2  ;;  %p2173_p13 = scmp.lt.u32.totalorder %s2166_s2, %s3347_s5 }
  0x6e   : > { %p2169_p3 = pnand %p2167_p5, %p3404_p11 }
  0x70   : > { %p2170_p12 = pneg %p2169_p3 }
  0x72   : > { %p2175_p4 = pnand %p2173_p13, %p2170_p12 }
  0x74   : > { %2178 = shalt.err (!%p2175_p4)
}
  0x75   : > { %s2179_s8 = scalar_lea.vmem %s310_s23, 1024  ;;  %p2187_p2 = scmp.lt.s32.totalorder %s310_s23, %s310_s23 }
  0x76   : > { %p2180_p7 = scmp.ne.s32.totalorder %s310_s23, %s2179_s8  ;;  %p2188_p6 = scmp.lt.s32.totalorder %s2179_s8, %s2179_s8 }
  0x78   : > { %p2182_p9 = pnand %p2180_p7, %p3404_p11  ;;  %p2189_p10 = por %p2188_p6, %p2187_p2 }
  0x7a   : > { %p2183_p8 = pneg %p2182_p9 }
  0x7c   : > { %p2190_p0 = pnand %p2189_p10, %p2183_p8 }
  0x7e   : > { %2193 = shalt.err (!%p2190_p0)
}
  0x7f   : > { %p3405_p5 = scmp.ne.s32.totalorder %s3396_s19, 0  ;;  %s3406_s4 = smov 4  }
  0x80   : > { %s3407_s10 = smov 64   ;;  %s2194_s12 = scalar_lea.hbm %s3348_s6, 1024 }
  0x81   : > { %1982 = dma.hbm_to_vmem [thread:$0]  (!%p3405_p5), %s3347_s5, 1024, %s310_s23, [#allocation11], %s3407_s10, %s3407_s10, %s3406_s4  }
  0x82   : > { %p2195_p3 = scmp.ne.s32.totalorder %s3348_s6, %s2194_s12  ;;  %p2201_p13 = scmp.lt.u32.totalorder %s2194_s12, %s3348_s6 }
  0x84   : > { %p2197_p0 = pnand %p2195_p3, %p3404_p11 }
  0x86   : > { %p2198_p12 = pneg %p2197_p0 }
  0x88   : > { %p2203_p4 = pnand %p2201_p13, %p2198_p12 }
  0x8a   : > { %2206 = shalt.err (!%p2203_p4)
}
  0x8b   : > { %s2207_s9 = scalar_lea.vmem %s323_s30, 1024  ;;  %p2215_p2 = scmp.lt.s32.totalorder %s323_s30, %s323_s30 }
  0x8c   : > { %p2208_p7 = scmp.ne.s32.totalorder %s323_s30, %s2207_s9  ;;  %p2216_p6 = scmp.lt.s32.totalorder %s2207_s9, %s2207_s9 }
  0x8e   : > { %p2210_p9 = pnand %p2208_p7, %p3404_p11  ;;  %p2217_p10 = por %p2216_p6, %p2215_p2 }
  0x90   : > { %p2211_p8 = pneg %p2210_p9 }
  0x92   : > { %p2218_p1 = pnand %p2217_p10, %p2211_p8 }
  0x94   : > { %2221 = shalt.err (!%p2218_p1)
}
  0x95   : > { %1985 = dma.hbm_to_vmem [thread:$0]  (!%p3405_p5), %s3348_s6, 1024, %s323_s30, [#allocation14], %s3407_s10, %s3407_s10, %s3406_s4  }
  0x96   : > { %s1798_s17 = sshll.u32 %s2588_s20, 5  ;;  %s1860_s14 = sshll.u32 %s2422_s0, 9 }
  0x97   : > { %s2715_s18 = scalar_lea.hbm %s3343_s1, %s1860_s14  ;;  %s343_s19 = scalar_lea.vmem [#allocation4], %s1798_s17 }
  0x98   : > { %s350_s28 = sshll.u32 %s343_s19, 4  ;;  %s1804_s21 = sshll.u32 %s2588_s20, 3  ;;  %s2718_s28 = int_to_ptr.vmem [resolvable:$true] %s350_s28 }
  0x99   : > { %s340_s8 = scalar_lea.sflag [#allocation5], %s2588_s20  ;;  %s2222_s9 = scalar_lea.hbm %s2715_s18, 512 }
  0x9a   : > { %p2223_p1 = scmp.ne.s32.totalorder %s2715_s18, %s2222_s9  ;;  %p3408_p11 = scmp.ne.s32.totalorder %s3403_s27, 0 }
  0x9b   : > { %s2227_s10 = scalar_lea.hbm %s3343_s1, 1024  ;;  %p2228_p0 = scmp.lt.u32.totalorder %s2715_s18, %s3343_s1 }
  0x9c   : > { %p2225_p5 = pnand %p2223_p1, %p3408_p11  ;;  %p2229_p12 = scmp.lt.u32.totalorder %s2227_s10, %s2222_s9 }
  0x9d   : > { %p2231_p4 = scmp.lt.u32.totalorder %s2222_s9, %s2715_s18 }
  0x9e   : > { %p2226_p3 = pneg %p2225_p5  ;;  %p2230_p13 = por %p2229_p12, %p2228_p0 }
  0xa0   : > { %p2232_p7 = por %p2231_p4, %p2230_p13 }
  0xa2   : > { %p2233_p9 = pnand %p2232_p7, %p2226_p3 }
  0xa4   : > { %2236 = shalt.err (!%p2233_p9)
}
  0xa5   : > { %s2237_s17 = scalar_lea.vmem %s2718_s28, 512  ;;  %s2433_s14 = smov [#allocation4]  }
  0xa6   : > { %p2238_p8 = scmp.ne.s32.totalorder %s2718_s28, %s2237_s17  ;;  %s2242_s25 = sshll.u32 %s2433_s14, 4  ;;  %s2243_s25 = int_to_ptr.vmem [resolvable:$false] %s2242_s25 }
  0xa7   : > { %s2244_s12 = scalar_lea.vmem %s2243_s25, 1024  ;;  %p2245_p10 = scmp.lt.s32.totalorder %s2718_s28, %s2243_s25 }
  0xa8   : > { %p2240_p2 = pnand %p2238_p8, %p3408_p11  ;;  %p2246_p1 = scmp.lt.s32.totalorder %s2244_s12, %s2237_s17 }
  0xaa   : > { %p2241_p6 = pneg %p2240_p2  ;;  %p2247_p5 = por %p2246_p1, %p2245_p10 }
  0xac   : > { %p2248_p0 = pnand %p2247_p5, %p2241_p6 }
  0xae   : > { %2251 = shalt.err (!%p2248_p0)
}
  0xaf   : > { %p3409_p3 = scmp.ne.s32.totalorder %s3401_s29, 0  ;;  %s1805_s19 = sshll.u32 %s2422_s0, 7 }
  0xb0   : > { %s385_s9 = scalar_lea.vmem [#allocation9], %s1804_s21  ;;  %s390_s23 = scalar_lea.hbm %s3345_s3, %s1805_s19 }
  0xb1   : > { %1989 = dma.hbm_to_vmem [thread:$0]  (!%p3409_p3), %s2715_s18, 512, %s2718_s28, %s340_s8, %s2429_s22, %s2429_s22, %s2430_s15  }
  0xb2   : > { %s392_s30 = sshll.u32 %s385_s9, 4  ;;  %s2252_s2 = scalar_lea.hbm %s390_s23, 128  ;;  %s393_s30 = int_to_ptr.vmem [resolvable:$true] %s392_s30 }
  0xb3   : > { %p2253_p12 = scmp.ne.s32.totalorder %s390_s23, %s2252_s2  ;;  %s2257_s25 = scalar_lea.hbm %s3345_s3, 256 }
  0xb4   : > { %p2258_p7 = scmp.lt.u32.totalorder %s390_s23, %s3345_s3  ;;  %p2259_p9 = scmp.lt.u32.totalorder %s2257_s25, %s2252_s2 }
  0xb5   : > { %p2255_p13 = pnand %p2253_p12, %p3408_p11  ;;  %p2261_p2 = scmp.lt.u32.totalorder %s2252_s2, %s390_s23 }
  0xb6   : > { %p2260_p8 = por %p2259_p9, %p2258_p7 }
  0xb7   : > { %p2256_p4 = pneg %p2255_p13 }
  0xb8   : > { %p2262_p6 = por %p2261_p2, %p2260_p8 }
  0xba   : > { %p2263_p10 = pnand %p2262_p6, %p2256_p4 }
  0xbc   : > { %2266 = shalt.err (!%p2263_p10)
}
  0xbd   : > { %s2267_s20 = scalar_lea.vmem %s393_s30, 128  ;;  %s2434_s15 = smov [#allocation9]  }
  0xbe   : > { %p2268_p1 = scmp.ne.s32.totalorder %s393_s30, %s2267_s20  ;;  %s2272_s18 = sshll.u32 %s2434_s15, 4  ;;  %s2273_s18 = int_to_ptr.vmem [resolvable:$false] %s2272_s18 }
  0xbf   : > { %s2274_s28 = scalar_lea.vmem %s2273_s18, 256  ;;  %p2275_p12 = scmp.lt.s32.totalorder %s393_s30, %s2273_s18 }
  0xc0   : > { %p2270_p5 = pnand %p2268_p1, %p3408_p11  ;;  %p2276_p13 = scmp.lt.s32.totalorder %s2274_s28, %s2267_s20 }
  0xc2   : > { %p2271_p0 = pneg %p2270_p5  ;;  %p2277_p3 = por %p2276_p13, %p2275_p12 }
  0xc4   : > { %p2278_p7 = pnand %p2277_p3, %p2271_p0 }
  0xc6   : > { %2281 = shalt.err (!%p2278_p7)
}
  0xc7   : > { %p3410_p9 = scmp.ne.s32.totalorder %s3401_s29, 0  ;;  %p3411_p4 = scmp.ne.s32.totalorder %s3395_s16, 0 }
  0xc8   : > { %s2769_s27 = sand.u32 (!%p3411_p4), 1, %s2414_s24   ;;  %p3412_p11 = scmp.ne.s32.totalorder (!%p3411_p4), %s3390_s13, 0 }
  0xc9   : > { %1995 = dma.hbm_to_vmem [thread:$0]  (!%p3410_p9), %s390_s23, 128, %s393_s30, %s2635_s11  }
  0xca   : > { %401 = sbr.rel (%p3411_p4) target bundleno = 752 (0x2f0), region = 48  ;;  %s1807_s21 = sshll.u32 (!%p3411_p4), %s2769_s27, 5 }
  0xcb   : > { %s404_s8 = scalar_lea.sflag (!%p3411_p4), [#allocation5], %s2769_s27  ;;  %s2775_s19 = scalar_lea.vmem (!%p3411_p4), [#allocation4], %s1807_s21 }
  0xd1   : > { %2385 = dma.done.wait (%p3412_p11), %s404_s8, 512  }
  0xd2   : > { %2387 = vsyncadd (%p3412_p11), %s404_s8, 4294966784  ;;  %s412_s16 = sand.u32 1, %s2532_s26   ;;  %s1808_s29 = sshll.u32 %s2769_s27, 4 }
  0xd3   : > { %s413_s11 = scalar_lea.sflag [#allocation8], %s412_s16  ;;  %s2787_s9 = scalar_lea.vmem [#allocation7], %s1808_s29 }
  0xd4   : > { %2389 = dma.done.wait (%p3412_p11), %s413_s11, 384  }
  0xd5   : > { %2391 = vsyncadd (%p3412_p11), %s413_s11, 4294966912  ;;  %s1809_s30 = sshll.u32 %s2769_s27, 3  ;;  %p3413_p3 = scmp.eq.s32.totalorder %s2532_s26, 0 }
  0xd6   : > { %s2796_s4 = scalar_lea.vmem [#allocation9], %s1809_s30 }
  0xd7   : > { %2393 = dma.done.wait (%p3413_p3), [#allocation11], 2048   ;;  %p3414_p8 = pmov %p3413_p3 }
  0xd8   : > { %p3415_p2 = pmov %p3413_p3 }
  0xd9   : > { %2395 = vsyncadd (%p3414_p8), [#allocation11], 4294965248 }
  0xda   : > { %2397 = dma.done.wait (%p3415_p2), [#allocation14], 1024   ;;  %p3416_p6 = pmov %p3415_p2 }
  0xdb   : > { %v2435_v0 = vmov 0.0   ;;  %vm2436_vm0 = vmmov 0   ;;  %v2060_v1 = vld [vmem:[#allocation13] sm:$0xff]   ;;  %v2061_v2 = vld [vmem:[#allocation13 + $0x8] sm:$0xff]   ;;  %v2062_v4 = vld [vmem:[#allocation13 + $0x10] sm:$0xff]   ;;  %s2832_s13 = sshll.u32 %s2532_s26, 7  ;;  %v498_v36 = vlaneseq }
  0xdc   : > { %2399 = vsyncadd (%p3416_p6), [#allocation14], 4294966272  ;;  %1892 = vmatprep.subr.bf16.mxu0 %v2435_v0  ;;  %1912 = vmatprep.subr.bf16.mxu1 %v2435_v0  ;;  %v2064_v3 = vld [vmem:[#allocation12] sm:$0xff]   ;;  %v2066_v5 = vld [vmem:[#allocation12 + $0x8] sm:$0xff]   ;;  %s496_s10 = sadd.s32 2, %s2832_s13  ;;  %s751_s2 = sadd.s32 1, %s2832_s13 }
  0xdd   : > { %1908 = vmatprep.mubr.msk.bf16.mxu0 %vm2436_vm0, %v2435_v0  ;;  %1928 = vmatprep.mubr.msk.bf16.mxu1 %vm2436_vm0, %v2435_v0  ;;  %v2063_v6 = vld [vmem:[#allocation13 + $0x18] sm:$0xff]   ;;  %v2068_v7 = vld [vmem:[#allocation12 + $0x10] sm:$0xff]   ;;  %v2065_v8 = vld [vmem:[#allocation13 + $0x20] sm:$0xff]   ;;  %s497_s23 = sld [smem:[#allocation3 + %s496_s10]]  ;;  %v2835_v37 = vshrl.u32 %v498_v36, 7  ;;  %s3171_s28 = scalar_lea.vmem [#allocation18], %s1809_s30 }
  0xde   : > { %1893 = vmatpush3.bf16.msra.mxu0 %v2060_v1  ;;  %1913 = vmatpush3.bf16.msra.mxu1 %v2064_v3  ;;  %v2070_v9 = vld [vmem:[#allocation12 + $0x18] sm:$0xff]   ;;  %v2067_v10 = vld [vmem:[#allocation13 + $0x28] sm:$0xff]   ;;  %v2072_v11 = vld [vmem:[#allocation12 + $0x20] sm:$0xff]   ;;  %v2437_v39 = vmov 1966171168   ;;  %s2841_s17 = sld [smem:[#allocation3 + %s751_s2]] }
  0xdf   : > { %1894 = vmatprep.subr.bf16.mxu0 %v2435_v0  ;;  %1914 = vmatprep.subr.bf16.mxu1 %v2435_v0  ;;  %v2069_v12 = vld [vmem:[#allocation13 + $0x30] sm:$0xff]   ;;  %v2074_v13 = vld [vmem:[#allocation12 + $0x28] sm:$0xff]   ;;  %v2071_v14 = vld [vmem:[#allocation13 + $0x38] sm:$0xff]   ;;  %v2839_v38 = vsub.s32 0, %v2835_v37  ;;  %v618_v40 = vunpack.c.l.s4 %v2437_v39  ;;  %v2438_v45 = vmov 1983009808  }
  0xe0   : > { %v504_v15 = vld [vmem:[%s2796_s4] sm:$0xff]  ;;  %v2073_v17 = vld [vmem:[#allocation10] sm:$0xff]   ;;  %v762_v23 = vld [vmem:[%s2787_s9 + $0x8] sm:$0xff]  ;;  %v878_v46 = vunpack.c.l.s4 %v2438_v45  ;;  %v2852_v47 = vsub.s32 2, %v2835_v37  ;;  %v2858_v50 = vsub.s32 1, %v2835_v37  ;;  %s2861_s12 = sld [smem:[#allocation3 + %s2832_s13]] }
  0xe1   : > { %v2076_v16 = vld [vmem:[#allocation12 + $0x30] sm:$0xff]   ;;  %v1181_v19 = vld [vmem:[%s2775_s19 + $0x8] sm:$0xff]  ;;  %v505_v20 = vpack.c.bf16 %v504_v15, %v504_v15  ;;  %v2075_v24 = vld [vmem:[#allocation10 + $0x8] sm:$0xff]   ;;  %v619_v44 = vunpack.c.0.s8 %v618_v40  ;;  %v2873_v58 = vsub.s32 3, %v2835_v37  ;;  %vm697_vm3 = vcmp.gt.s32.totalorder %v2835_v37, 0  ;;  %s1863_s8 = sshll.u32 %s2532_s26, 8 }
  0xe2   : > { %1895 = vmatpush3.bf16.msra.mxu0 %v2061_v2  ;;  %1915 = vmatpush3.bf16.msra.mxu1 %v2066_v5  ;;  %v1180_v18 = vld [vmem:[%s2775_s19] sm:$0xff]  ;;  %v2078_v21 = vld [vmem:[#allocation12 + $0x38] sm:$0xff]   ;;  %v2080_v29 = vld [vmem:[#allocation10 + $0x20] sm:$0xff]   ;;  %v879_v57 = vunpack.c.0.s8 %v878_v46  ;;  %vm702_vm4 = vcmp.lt.s32.totalorder %v2835_v37, 7  ;;  %v2922_v45 = vadd.s32 24, %v2835_v37  ;;  %vm1080_vm10 = vcmp.lt.s32.totalorder %v2835_v37, 1 }
  0xe3   : > { %1896 = vmatprep.subr.bf16.mxu0 %v2435_v0  ;;  %1916 = vmatprep.subr.bf16.mxu1 %v2435_v0  ;;  %v761_v22 = vld [vmem:[%s2787_s9] sm:$0xff]  ;;  %v1184_v25 = vpack.c.bf16 %v1181_v19, %v1180_v18  ;;  %v2079_v28 = vld [vmem:[#allocation10 + $0x18] sm:$0xff]   ;;  %v2081_v30 = vld [vmem:[#allocation10 + $0x28] sm:$0xff]   ;;  %v500_v42 = vstv %s497_s23  ;;  %v2864_v52 = vsub.s32 %v619_v44, %v2835_v37  ;;  %v1165_v19 = vadd.s32 16, %v2835_v37  ;;  %s1589_s9 = sshll.u32 %s3171_s28, 4  ;;  %s3419_s30 = sld [smem:[#allocation30_spill]]  ;;  %s3214_s9 = int_to_ptr.vmem [resolvable:$true] %s1589_s9 }
  0xe4   : > { %v763_v26 = vpack.c.bf16 %v762_v23, %v761_v22  ;;  %v2077_v27 = vld [vmem:[#allocation10 + $0x10] sm:$0xff]   ;;  %v2083_v32 = vld [vmem:[#allocation10 + $0x38] sm:$0xff]   ;;  %v1182_v33 = vld [vmem:[%s2775_s19 + $0x10] sm:$0xff]  ;;  %vm501_vm1 = vcmp.lt.s32.totalorder %v2835_v37, %v500_v42  ;;  %v754_v54 = vstv %s2841_s17  ;;  %vm1404_vm12 = vcmp.lt.s32.totalorder %v2922_v45, 31  ;;  %s3420_s23 = sld [smem:[#allocation35_spill]]  ;;  %s3422_s25 = sld [smem:[#allocation36_spill]] }
  0xe5   : > { %v2082_v31 = vld [vmem:[#allocation10 + $0x30] sm:$0xff]   ;;  %v1183_v34 = vld [vmem:[%s2775_s19 + $0x18] sm:$0xff]  ;;  %v2855_v48 = vsel %vm501_vm1, 1.0, %v2435_v0  ;;  %v2870_v56 = vld [vmem:[%s3349_s7 + $0x8] sm:$0xff]  ;;  %vm2879_vm2 = vcmp.lt.s32.totalorder %v2835_v37, %v754_v54  ;;  %s484_s19 = scalar_lea.vmem [#allocation16], %s1808_s29  ;;  %s3222_s20 = scalar_lea.sflag [#allocation17], %s412_s16 }
  0xe6   : > { %1897 = vmatpush3.bf16.msra.mxu0 %v2062_v4  ;;  %1917 = vmatpush3.bf16.msra.mxu1 %v2068_v7  ;;  %v1185_v35 = vpack.c.bf16 %v1183_v34, %v1182_v33  ;;  %v2846_v41 = vld [vmem:[%s3349_s7 + $0x10] sm:$0xff]  ;;  %v783_v4 = vrot.slane %v2870_v56, %v2839_v38  ;;  %v2891_v7 = vsub.s32 %v879_v57, %v2835_v37  ;;  %v2935_v62 = vld [vmem:[%s3349_s7] sm:$0xff]  ;;  %s1573_s11 = sshll.u32 %s484_s19, 4  ;;  %s2439_s18 = smov [#allocation16]   ;;  %s3206_s11 = int_to_ptr.vmem [resolvable:$true] %s1573_s11 }
  0xe7   : > { %1898 = vmatprep.subr.bf16.mxu0 %v2435_v0  ;;  %1918 = vmatprep.subr.bf16.mxu1 %v2435_v0  ;;  %v525_v43 = vrot.slane %v2846_v41, %v2839_v38  ;;  %v715_v61 = vrot.slane %v2846_v41, %v2852_v47  ;;  %v710_v1 = vrot.slane %v2846_v41, %v2858_v50  ;;  %s2282_s15 = scalar_lea.vmem %s3206_s11, 256 }
  0xe8   : > { %p2283_p10 = scmp.ne.s32.totalorder %s3206_s11, %s2282_s15 }
  0xe9   : > { %p3424_p1 = scmp.ne.s32.totalorder %s3419_s30, 0 }
  0xea   : > { %1899 = vmatpush3.bf16.msra.mxu0 %v2063_v6  ;;  %1919 = vmatpush3.bf16.msra.mxu1 %v2070_v9  ;;  %s3421_s2 = smov %s3420_s23  ;;  %s3204_s29 = scalar_lea.hbm %s3420_s23, %s1863_s8 }
  0xeb   : > { %1900 = vmatprep.subr.bf16.mxu0 %v2435_v0  ;;  %1920 = vmatprep.subr.bf16.mxu1 %v2435_v0  ;;  %s3212_s22 = scalar_lea.hbm %s3422_s25, %s2832_s13  ;;  %p2284_p5 = pnand %p2283_p10, %p3424_p1 }
  0xed   : > { %p2285_p0 = pneg %p2284_p5 }
  0xee   : > { %1901 = vmatpush3.bf16.msra.mxu0 %v2065_v8  ;;  %1921 = vmatpush3.bf16.msra.mxu1 %v2072_v11  ;;  %v2894_v8 = vadd.s32 8, %v2835_v37  ;;  %v721_v11 = vrot.slane %v2846_v41, %v2873_v58 }
  0xef   : > { %1902 = vmatprep.subr.bf16.mxu0 %v2435_v0  ;;  %1922 = vmatprep.subr.bf16.mxu1 %v2435_v0 }
  0xf0   : > { %vm756_vm5 = vcmp.lt.s32.totalorder %v2894_v8, %v754_v54  ;;  %vm1088_vm11 = vcmp.lt.s32.totalorder %v2894_v8, 15 }
  0xf2   : > { %1903 = vmatpush3.bf16.msra.mxu0 %v2067_v10  ;;  %1923 = vmatpush3.bf16.msra.mxu1 %v2074_v13 }
  0xf3   : > { %1904 = vmatprep.subr.bf16.mxu0 %v2435_v0  ;;  %1924 = vmatprep.subr.bf16.mxu1 %v2435_v0 }
  0xf6   : > { %1905 = vmatpush3.bf16.msra.mxu0 %v2069_v12  ;;  %1925 = vmatpush3.bf16.msra.mxu1 %v2076_v16 }
  0xf7   : > { %1906 = vmatprep.subr.bf16.mxu0 %v2435_v0  ;;  %1926 = vmatprep.subr.bf16.mxu1 %v2435_v0 }
  0xfa   : > { %1907 = vmatpush3.bf16.msra.mxu0 %v2071_v14  ;;  %1927 = vmatpush3.bf16.msra.mxu1 %v2078_v21  ;;  %v2902_v14 = vsel %vm2879_vm2, 1.0, %v2435_v0 }
  0xfb   : > { %1932 = vmatprep.subr.bf16.mxu0 %v2073_v17 }
  0xfd   : > { %1909 = vmatmul.mubr.bf16.vlgmr.msra.gmra.mrb[0].mxu0 %v505_v20  ;;  %1929 = vmatmul.mubr.bf16.vlgmr.msra.gmra.mrb[0].mxu1 %v763_v26  ;;  %v1167_v20 = vstv %s2861_s12  ;;  %s3423_s12 = smov %s3422_s25 }
  0xfe   : > { %1933 = vmatpush3.bf16.msra.mxu0 %v2073_v17  ;;  %1948 = vmatprep.mubr.bf16.mxu0 %v1184_v25  ;;  %vm1170_vm6 = vcmp.lt.s32.totalorder %v1165_v19, %v1167_v20  ;;  %vm1168_vm7 = vcmp.lt.s32.totalorder %v2835_v37, %v1167_v20  ;;  %vm1171_vm8 = vcmp.lt.s32.totalorder %v2922_v45, %v1167_v20 }
  0xff   : > { %1934 = vmatprep.subr.bf16.mxu0 %v2075_v24  ;;  %vm1169_vm9 = vcmp.lt.s32.totalorder %v2894_v8, %v1167_v20  ;;  %v2980_v19 = vrot.slane %v2870_v56, %v2858_v50 }
 0x100   : > { %v2983_v20 = vsel %vm1169_vm9, 1.0, %v2435_v0 }
 0x102   : > { %1935 = vmatpush3.bf16.msra.mxu0 %v2075_v24 }
 0x103   : > { %1936 = vmatprep.subr.bf16.mxu0 %v2077_v27 }
 0x106   : > { %1937 = vmatpush3.bf16.msra.mxu0 %v2077_v27 }
 0x107   : > { %1938 = vmatprep.subr.bf16.mxu0 %v2079_v28 }
 0x10a   : > { %1939 = vmatpush3.bf16.msra.mxu0 %v2079_v28 }
 0x10b   : > { %1940 = vmatprep.subr.bf16.mxu0 %v2080_v29 }
 0x10e   : > { %1941 = vmatpush3.bf16.msra.mxu0 %v2080_v29 }
 0x10f   : > { %1942 = vmatprep.subr.bf16.mxu0 %v2081_v30 }
 0x112   : > { %1943 = vmatpush3.bf16.msra.mxu0 %v2081_v30 }
 0x113   : > { %1944 = vmatprep.subr.bf16.mxu0 %v2082_v31 }
 0x116   : > { %1945 = vmatpush3.bf16.msra.mxu0 %v2082_v31 }
 0x117   : > { %1946 = vmatprep.subr.bf16.mxu0 %v2083_v32 }
 0x11a   : > { %1947 = vmatpush3.bf16.msra.mxu0 %v2083_v32 }
 0x11d   : > { %1949 = vmatmul.mubr.bf16.vlgmr.msra.gmra.mrb[4].mxu0 %v1185_v35 }
 0x1d0   : > { %v608_v49 = vpop.f32.mrb[0].mxu0  ;;  %v866_v63 = vpop.f32.mrb[0].mxu1 }
 0x1d1   : > { %v609_v51 = vadd.f32 %v608_v49, %v525_v43  ;;  %v1910_v53 = vpop.f32.mrb[1].mxu0  ;;  %v1930_v5 = vpop.f32.mrb[1].mxu1  ;;  %v867_v23 = vadd.f32 %v866_v63, %v783_v4  ;;  %v2938_v63 = vsel %vm756_vm5, 1.0, %v2435_v0 }
 0x1d2   : > { %v611_v55 = vpop.f32.mrb[2].mxu0  ;;  %v869_v9 = vpop.f32.mrb[2].mxu1  ;;  %v2952_v5 = vrot.slane %v2935_v62, %v2839_v38 }
 0x1d3   : > { %v614_v59 = vmul.f32 %v2855_v48, %v609_v51  ;;  %v1911_v60 = vpop.f32.mrb[3].mxu0  ;;  %v1931_v16 = vpop.f32.mrb[3].mxu1  ;;  %v873_v55 = vmul.f32 %v2902_v14, %v867_v23 }
 0x1d4   : > { %v870_v60 = vadd.f32 %v869_v9, %v783_v4  ;;  %v2948_v4 = vsel %vm1170_vm6, 1.0, %v2435_v0 }
 0x1d5   : > { %v616_v2 = vcombine.high %v614_v59, %v614_v59  ;;  %v623_v3 = vrot.slane %v614_v59, %v2864_v52  ;;  %v698_v6 = vrot.slane %v614_v59, 7  ;;  %v703_v10 = vrot.slane %v614_v59, 1 }
 0x1d6   : > { %v716_v28 = vmul.f32 %v715_v61, %v614_v59  ;;  %v874_v9 = vmul.f32 %v2938_v63, %v870_v60 }
 0x1d7   : > { %v631_v12 = vcombine.high %v623_v3, %v623_v3  ;;  %v639_v13 = vrot.slane %v623_v3, %v2864_v52  ;;  %v630_v15 = vrot.slane %v616_v2, %v2864_v52  ;;  %v701_v17 = vsel %vm697_vm3, %v698_v6, 0.0 }
 0x1d8   : > { %v706_v18 = vsel %vm702_vm4, %v703_v10, 0.0  ;;  %v711_v27 = vmul.f32 %v710_v1, %v701_v17 }
 0x1d9   : > { %v653_v21 = vrot.slane %v631_v12, %v2864_v52  ;;  %v661_v22 = vcombine.high %v639_v13, %v639_v13  ;;  %v632_v24 = vcombine.high %v630_v15, %v630_v15  ;;  %v668_v25 = vrot.slane %v639_v13, %v2839_v38 }
 0x1da   : > { %v646_v26 = vrot.slane %v630_v15, %v2864_v52  ;;  %v722_v32 = vmul.f32 %v721_v11, %v706_v18  ;;  %v717_v36 = vadd.f32 %v716_v28, %v711_v27  ;;  %v2960_v11 = vrot.slane %v2935_v62, %v2852_v47 }
 0x1db   : > { %v663_v29 = vcombine.high %v653_v21, %v653_v21  ;;  %v672_v30 = vrot.slane %v653_v21, %v2839_v38  ;;  %v660_v31 = vrot.slane %v632_v24, %v2864_v52  ;;  %v676_v33 = vrot.slane %v661_v22, %v2839_v38 }
 0x1dc   : > { %v662_v34 = vcombine.high %v646_v26, %v646_v26  ;;  %v684_v35 = vrot.slane %v646_v26, %v2839_v38  ;;  %v723_v44 = vadd.f32 %v722_v32, %v717_v36  ;;  %v2963_v12 = vsel %vm1168_vm7, 1.0, %v2435_v0 }
 0x1dd   : > { %v680_v39 = vrot.slane %v663_v29, %v2839_v38  ;;  %v875_v40 = vcombine.low %v668_v25, %v672_v30  ;;  %v664_v42 = vcombine.high %v660_v31, %v660_v31  ;;  %v688_v43 = vrot.slane %v660_v31, %v2839_v38 }
 0x1de   : > { %v692_v49 = vrot.slane %v662_v34, %v2839_v38  ;;  %v2928_v57 = vmul.f32 %v2855_v48, %v723_v44  ;;  %v2966_v13 = vsel %vm1171_vm8, 1.0, %v2435_v0  ;;  %v2970_v15 = vrot.slane %v2870_v56, %v2852_v47 }
 0x1df   : > { %v876_v46 = vcombine.low %v676_v33, %v680_v39  ;;  %v696_v51 = vrot.slane %v664_v42, %v2839_v38  ;;  %v892_v53 = vcombine.low %v684_v35, %v688_v43  ;;  %v883_v59 = vrot.slane %v875_v40, %v2891_v7 }
 0x1e0   : > { %725 = vadd.xlane.f32.xlu1 %v2928_v57  ;;  %v727_v3 = vmul.f32 %v2928_v57, %v2928_v57  ;;  %v2987_v21 = vrot.slane %v2870_v56, %v2873_v58  ;;  %v2991_v47 = vrot.slane %v2935_v62, %v2858_v50  ;;  %v2995_v22 = vrot.slane %v2935_v62, %v2873_v58 }
 0x1e1   : > { %v890_v54 = vrot.slane %v876_v46, %v2891_v7  ;;  %v893_v61 = vcombine.low %v692_v49, %v696_v51  ;;  %v900_v1 = vrot.slane %v892_v53, %v2891_v7 }
 0x1e3   : > { %v891_v48 = vcombine.low %v883_v59, %v890_v54  ;;  %v907_v2 = vrot.slane %v893_v61, %v2891_v7 }
 0x1e4   : > { %728 = vadd.xlane.f32.xlu1 %v727_v3 }
 0x1e5   : > { %v2954_v6 = vadd.f32 %v891_v48, %v873_v55  ;;  %v908_v10 = vcombine.low %v900_v1, %v907_v2 }
 0x1e7   : > { %v915_v16 = vcombine.high %v2954_v6, %v2954_v6  ;;  %v2974_v17 = vadd.f32 %v908_v10, %v874_v9  ;;  %v922_v18 = vrot.slane %v2954_v6, %v2864_v52  ;;  %v1078_v27 = vrot.slane %v2954_v6, 7 }
 0x1e8   : > { %v1089_v50 = vrot.slane %v2954_v6, 1  ;;  %v3007_v28 = vmul.f32 %v2970_v15, %v2954_v6 }
 0x1e9   : > { %v964_v23 = vcombine.high %v2974_v17, %v2974_v17  ;;  %v971_v24 = vrot.slane %v2974_v17, %v2864_v52  ;;  %v930_v0 = vcombine.high %v922_v18, %v922_v18  ;;  %v938_v25 = vrot.slane %v922_v18, %v2864_v52 }
 0x1ea   : > { %v929_v26 = vrot.slane %v915_v16, %v2864_v52  ;;  %v1079_v35 = vrot.slane %v2974_v17, 7 }
 0x1eb   : > { %v979_v58 = vcombine.high %v971_v24, %v971_v24  ;;  %v987_v29 = vrot.slane %v971_v24, %v2864_v52  ;;  %v952_v30 = vrot.slane %v930_v0, %v2864_v52  ;;  %v960_v31 = vcombine.high %v938_v25, %v938_v25 }
 0x1ec   : > { %v1016_v32 = vrot.slane %v938_v25, %v2839_v38  ;;  %v978_v33 = vrot.slane %v964_v23, %v2864_v52  ;;  %v931_v34 = vcombine.high %v929_v26, %v929_v26  ;;  %v945_v42 = vrot.slane %v929_v26, %v2864_v52 }
 0x1ed   : > { %v1001_v36 = vrot.slane %v979_v58, %v2864_v52  ;;  %v1009_v39 = vcombine.high %v987_v29, %v987_v29  ;;  %v962_v40 = vcombine.high %v952_v30, %v952_v30  ;;  %v1048_v43 = vrot.slane %v987_v29, %v2839_v38 }
 0x1ee   : > { %v1020_v44 = vrot.slane %v952_v30, %v2839_v38  ;;  %v980_v46 = vcombine.high %v978_v33, %v978_v33  ;;  %v994_v49 = vrot.slane %v978_v33, %v2864_v52  ;;  %v1024_v55 = vrot.slane %v960_v31, %v2839_v38 }
 0x1ef   : > { %v1011_v51 = vcombine.high %v1001_v36, %v1001_v36  ;;  %v1052_v53 = vrot.slane %v1001_v36, %v2839_v38  ;;  %v1028_v59 = vrot.slane %v962_v40, %v2839_v38  ;;  %v1056_v54 = vrot.slane %v1009_v39, %v2839_v38 }
 0x1f0   : > { %v1950_v60 = vpop.f32.mrb[4].mxu0  ;;  %v1307_v61 = vcombine.low %v1016_v32, %v1020_v44  ;;  %v1008_v48 = vrot.slane %v980_v46, %v2864_v52  ;;  %v1010_v1 = vcombine.high %v994_v49, %v994_v49  ;;  %v1064_v16 = vrot.slane %v994_v49, %v2839_v38 }
 0x1f1   : > { %v1060_v2 = vrot.slane %v1011_v51, %v2839_v38  ;;  %v1341_v3 = vcombine.low %v1048_v43, %v1052_v53  ;;  %v1288_v9 = vpop.f32.mrb[5].mxu0  ;;  %v1308_v10 = vcombine.low %v1024_v55, %v1028_v59  ;;  %v1297_v18 = vadd.f32 %v1950_v60, %v2952_v5 }
 0x1f2   : > { %v1289_v23 = vadd.f32 %v1288_v9, %v2952_v5  ;;  %v1012_v24 = vcombine.high %v1008_v48, %v1008_v48  ;;  %v1068_v0 = vrot.slane %v1008_v48, %v2839_v38  ;;  %v1951_v25 = vpop.f32.mrb[6].mxu0  ;;  %v1315_v29 = vrot.slane %v1307_v61, %v2891_v7 }
 0x1f3   : > { %v1342_v26 = vcombine.low %v1056_v54, %v1060_v2  ;;  %v1349_v58 = vrot.slane %v1341_v3, %v2891_v7  ;;  %v1322_v30 = vrot.slane %v1308_v10, %v2891_v7  ;;  %v1291_v31 = vpop.f32.mrb[7].mxu0  ;;  %v1072_v33 = vrot.slane %v1010_v1, %v2839_v38 }
 0x1f4   : > { %v1303_v32 = vmul.f32 %v2963_v12, %v1289_v23  ;;  %v1076_v36 = vrot.slane %v1012_v24, %v2839_v38  ;;  %v1300_v39 = vadd.f32 %v1951_v25, %v2952_v5  ;;  %v1358_v44 = vcombine.low %v1064_v16, %v1068_v0 }
 0x1f5   : > { %v1356_v40 = vrot.slane %v1342_v26, %v2891_v7  ;;  %v1323_v43 = vcombine.low %v1315_v29, %v1322_v30  ;;  %v959_v46 = vrot.slane %v931_v34, %v2864_v52  ;;  %v1305_v49 = vmul.f32 %v2948_v4, %v1297_v18 }
 0x1f6   : > { %v1359_v51 = vcombine.low %v1072_v33, %v1076_v36  ;;  %v961_v53 = vcombine.high %v945_v42, %v945_v42  ;;  %v1090_v55 = vrot.slane %v2974_v17, 1  ;;  %v1032_v61 = vrot.slane %v945_v42, %v2839_v38 }
 0x1f7   : > { %v1357_v59 = vcombine.low %v1349_v58, %v1356_v40  ;;  %v3042_v54 = vadd.f32 %v1323_v43, %v1303_v32  ;;  %v963_v60 = vcombine.high %v959_v46, %v959_v46  ;;  %v1366_v48 = vrot.slane %v1358_v44, %v2891_v7 }
 0x1f8   : > { %v1373_v1 = vrot.slane %v1359_v51, %v2891_v7  ;;  %v1036_v52 = vrot.slane %v959_v46, %v2839_v38  ;;  %v1292_v34 = vadd.f32 %v1291_v31, %v2952_v5  ;;  %v1306_v3 = vmul.f32 %v2966_v13, %v1300_v39 }
 0x1f9   : > { %v1381_v2 = vadd.f32 %v1357_v59, %v1305_v49  ;;  %v1040_v9 = vrot.slane %v961_v53, %v2839_v38  ;;  %v1110_v10 = vmul.f32 %v2970_v15, %v2974_v17  ;;  %v1385_v16 = vrot.slane %v3042_v54, 7 }
 0x1fa   : > { %v1374_v18 = vcombine.low %v1366_v48, %v1373_v1  ;;  %v1044_v42 = vrot.slane %v963_v60, %v2839_v38  ;;  %v1324_v23 = vcombine.low %v1032_v61, %v1036_v52  ;;  %v1405_v0 = vrot.slane %v3042_v54, 1 }
 0x1fb   : > { %v1387_v24 = vrot.slane %v1381_v2, 7  ;;  %v1304_v25 = vmul.f32 %v2983_v20, %v1292_v34  ;;  %v1081_v5 = vsel %vm1080_vm10, %v1078_v27, %v1079_v35  ;;  %v1407_v26 = vrot.slane %v1381_v2, 1 }
 0x1fc   : > { %v1382_v15 = vadd.f32 %v1374_v18, %v1306_v3  ;;  %v1325_v58 = vcombine.low %v1040_v9, %v1044_v42  ;;  %v1092_v38 = vsel %vm702_vm4, %v1090_v55, %v1089_v50  ;;  %v1104_v30 = vmul.f32 %v2980_v19, %v1081_v5 }
 0x1fd   : > { %v1098_v29 = vsel %vm1088_vm11, %v1092_v38, 0.0  ;;  %v1082_v31 = vsel %vm1080_vm10, %v1079_v35, %v1078_v27  ;;  %v1091_v32 = vsel %vm702_vm4, %v1089_v50, %v1090_v55  ;;  %v1332_v39 = vrot.slane %v1324_v23, %v2891_v7 }
 0x1fe   : > { %v1388_v33 = vrot.slane %v1382_v15, 7  ;;  %v1408_v36 = vrot.slane %v1382_v15, 1  ;;  %v1339_v8 = vrot.slane %v1325_v58, %v2891_v7  ;;  %v1440_v40 = vmul.f32 %v2960_v11, %v1382_v15 }
 0x1ff   : > { %v1112_v43 = vadd.f32 %v1110_v10, %v1104_v30  ;;  %v1118_v44 = vmul.f32 %v2987_v21, %v1098_v29  ;;  %v1085_v17 = vsel %vm697_vm3, %v1082_v31, 0.0  ;;  %v1117_v7 = vmul.f32 %v2987_v21, %v1091_v32 }
 0x200   : > { %v1340_v27 = vcombine.low %v1332_v39, %v1339_v8  ;;  %v1103_v6 = vmul.f32 %v2980_v19, %v1085_v17  ;;  %v1409_v50 = vsel %vm702_vm4, %v1407_v26, %v1408_v36  ;;  %v1389_v35 = vsel %vm1080_vm10, %v1387_v24, %v1388_v33 }
 0x201   : > { %v1120_v46 = vadd.f32 %v1118_v44, %v1112_v43  ;;  %v1412_v49 = vsel %vm702_vm4, %v1408_v36, %v1405_v0  ;;  %v1432_v51 = vmul.f32 %v2991_v47, %v1389_v35  ;;  %v1392_v59 = vsel %vm1080_vm10, %v1388_v33, %v1385_v16 }
 0x202   : > { %v1380_v53 = vadd.f32 %v1340_v27, %v1304_v25  ;;  %v1111_v55 = vadd.f32 %v3007_v28, %v1103_v6  ;;  %v1424_v19 = vsel %vm1404_vm12, %v1412_v49, 0.0  ;;  %v1397_v48 = vsel %vm697_vm3, %v1392_v59, 0.0 }
 0x203   : > { %v3102_v60 = vmul.f32 %v2938_v63, %v1120_v46  ;;  %v1444_v61 = vadd.f32 %v1440_v40, %v1432_v51  ;;  %v1452_v21 = vmul.f32 %v2995_v22, %v1424_v19  ;;  %v1439_v28 = vmul.f32 %v2960_v11, %v1381_v2 }
 0x204   : > { %v1386_v1 = vrot.slane %v1380_v53, 7  ;;  %v1406_v52 = vrot.slane %v1380_v53, 1  ;;  %v1119_v34 = vadd.f32 %v1117_v7, %v1111_v55  ;;  %v1437_v45 = vmul.f32 %v2960_v11, %v3042_v54 }
 0x205   : > { %1125 = vadd.xlane.f32.xlu0 %v3102_v60  ;;  %v1456_v3 = vadd.f32 %v1452_v21, %v1444_v61  ;;  %v1429_v63 = vmul.f32 %v2991_v47, %v1397_v48  ;;  %v1438_v42 = vmul.f32 %v2960_v11, %v1380_v53  ;;  %v1451_v25 = vmul.f32 %v2995_v22, %v1409_v50 }
 0x206   : > { %v3113_v9 = vmul.f32 %v2902_v14, %v1119_v34  ;;  %v1391_v10 = vsel %vm1080_vm10, %v1385_v16, %v1386_v1  ;;  %v1410_v18 = vsel %vm702_vm4, %v1406_v52, %v1407_v26  ;;  %v1390_v2 = vsel %vm1080_vm10, %v1386_v1, %v1387_v24 }
 0x207   : > { %v1430_v54 = vmul.f32 %v2991_v47, %v1391_v10  ;;  %v1431_v23 = vmul.f32 %v2991_v47, %v1390_v2  ;;  %v1411_v16 = vsel %vm702_vm4, %v1405_v0, %v1406_v52  ;;  %v1441_v5 = vadd.f32 %v1437_v45, %v1429_v63 }
 0x208   : > { %v1127_v14 = vmul.f32 %v3113_v9, %v3113_v9  ;;  %v1450_v24 = vmul.f32 %v2995_v22, %v1410_v18  ;;  %v1449_v11 = vmul.f32 %v2995_v22, %v1411_v16  ;;  %v1128_v47 = vmul.f32 %v3102_v60, %v3102_v60 }
 0x209   : > { %1123 = vadd.xlane.f32.xlu0 %v3113_v9  ;;  %v1442_v26 = vadd.f32 %v1438_v42, %v1430_v54  ;;  %v1443_v15 = vadd.f32 %v1439_v28, %v1431_v23  ;;  %v3145_v31 = vmul.f32 %v2966_v13, %v1456_v3  ;;  %v3159_v44 = vsub.s32 4, %v2835_v37 }
 0x20a   : > { %1129 = vadd.xlane.f32.xlu1 %v1127_v14  ;;  %v1453_v29 = vadd.f32 %v1449_v11, %v1441_v5  ;;  %v3162_v17 = vsub.s32 5, %v2835_v37 }
 0x20b   : > { %v1454_v58 = vadd.f32 %v1450_v24, %v1442_v26  ;;  %v1455_v38 = vadd.f32 %v1451_v25, %v1443_v15  ;;  %v741_v6 = vrot.slane %v2846_v41, %v3159_v44  ;;  %v1152_v15 = vrot.slane %v2870_v56, %v3159_v44 }
 0x20c   : > { %v3148_v32 = vmul.f32 %v2963_v12, %v1453_v29  ;;  %v746_v46 = vrot.slane %v2846_v41, %v3162_v17 }
 0x20d   : > { %1131 = vadd.xlane.f32.xlu0 %v1128_v47  ;;  %v3135_v30 = vmul.f32 %v2983_v20, %v1454_v58  ;;  %v3138_v0 = vmul.f32 %v2948_v4, %v1455_v38  ;;  %v1472_v20 = vmul.f32 %v3145_v31, %v3145_v31 }
 0x20e   : > { %v1469_v4 = vmul.f32 %v3148_v32, %v3148_v32 }
 0x20f   : > { %1465 = vadd.xlane.f32.xlu1 %v3138_v0  ;;  %v1470_v22 = vmul.f32 %v3135_v30, %v3135_v30  ;;  %v1471_v33 = vmul.f32 %v3138_v0, %v3138_v0 }
 0x211   : > { %1463 = vadd.xlane.f32.xlu0 %v3135_v30 }
 0x213   : > { %1475 = vadd.xlane.f32.xlu1 %v1470_v22 }
 0x215   : > { %1467 = vadd.xlane.f32.xlu0 %v3145_v31 }
 0x217   : > { %1461 = vadd.xlane.f32.xlu1 %v3148_v32 }
 0x219   : > { %1473 = vadd.xlane.f32.xlu0 %v1469_v4 }
 0x21b   : > { %1479 = vadd.xlane.f32.xlu1 %v1472_v20  ;;  %v1158_v20 = vrot.slane %v2870_v56, %v3162_v17 }
 0x21d   : > { %1477 = vadd.xlane.f32.xlu0 %v1471_v33 }
 0x26d   : > { %v726_v13 = vpop.xlane.xlu1 %725 }
 0x26e   : > { %v730_v36 = vmul.f32 0.0078125, %v726_v13 }
 0x270   : > { %v732_v39 = vmul.f32 %v730_v36, %v730_v36  ;;  %v734_v27 = vsub.f32 %v2928_v57, %v730_v36 }
 0x271   : > { %v729_v12 = vpop.xlane.xlu1 %728 }
 0x272   : > { %v731_v8 = vmul.f32 0.0078125, %v729_v12 }
 0x274   : > { %v733_v40 = vsub.f32 %v731_v8, %v732_v39 }
 0x276   : > { %v735_v43 = vadd.f32 1e-05, %v733_v40 }
 0x278   : > { %2084 = vrsqrt.f32 %v735_v43 }
 0x282   : > { %v2085_v50 = vpop.eup %2084 }
 0x283   : > { %v737_v35 = vmul.f32 %v2085_v50, %v734_v27 }
 0x285   : > { %v742_v7 = vmul.f32 %v741_v6, %v737_v35  ;;  %v3198_v35 = vrot.slane %v2935_v62, %v3159_v44 }
 0x287   : > { %v747_v49 = vadd.f32 %v746_v46, %v742_v7 }
 0x289   : > { %748 = vst [vmem:[%s3171_s28] sm:$0xff] %v747_v49  ;;  %s2286_s28 = sshll.u32 %s2439_s18, 4  ;;  %s2287_s28 = int_to_ptr.vmem [resolvable:$false] %s2286_s28 }
 0x28a   : > { %s2288_s13 = scalar_lea.vmem %s2287_s28, 512  ;;  %p2289_p12 = scmp.lt.s32.totalorder %s3206_s11, %s2287_s28 }
 0x28b   : > { %p2290_p13 = scmp.lt.s32.totalorder %s2288_s13, %s2282_s15 }
 0x28d   : > { %p2291_p7 = por %p2290_p13, %p2289_p12 }
 0x28f   : > { %p2292_p9 = pnand %p2291_p7, %p2285_p0 }
 0x292   : > { %v1126_v51 = vpop.xlane.xlu0 %1125 }
 0x293   : > { %v1134_v53 = vmul.f32 0.0078125, %v1126_v51 }
 0x295   : > { %v1138_v21 = vmul.f32 %v1134_v53, %v1134_v53  ;;  %v1142_v4 = vsub.f32 %v3102_v60, %v1134_v53 }
 0x296   : > { %v1124_v37 = vpop.xlane.xlu0 %1123 }
 0x297   : > { %v1130_v55 = vpop.xlane.xlu1 %1129  ;;  %v1133_v57 = vmul.f32 0.0078125, %v1124_v37 }
 0x298   : > { %v1135_v19 = vmul.f32 0.0078125, %v1130_v55 }
 0x299   : > { %v1137_v59 = vmul.f32 %v1133_v57, %v1133_v57  ;;  %v1141_v11 = vsub.f32 %v3113_v9, %v1133_v57 }
 0x29a   : > { %v1132_v61 = vpop.xlane.xlu0 %1131 }
 0x29b   : > { %v1139_v48 = vsub.f32 %v1135_v19, %v1137_v59  ;;  %v1136_v1 = vmul.f32 0.0078125, %v1132_v61 }
 0x29c   : > { %v1466_v52 = vpop.xlane.xlu1 %1465 }
 0x29d   : > { %v1143_v41 = vadd.f32 1e-05, %v1139_v48  ;;  %v1140_v34 = vsub.f32 %v1136_v1, %v1138_v21  ;;  %v3178_v5 = vmul.f32 0.0078125, %v1466_v52 }
 0x29e   : > { %v1464_v28 = vpop.xlane.xlu0 %1463 }
 0x29f   : > { %2086 = vrsqrt.f32 %v1143_v41  ;;  %v1144_v45 = vadd.f32 1e-05, %v1140_v34  ;;  %v1482_v3 = vmul.f32 0.0078125, %v1464_v28  ;;  %v1491_v9 = vmul.f32 %v3178_v5, %v3178_v5 }
 0x2a0   : > { %v1476_v63 = vpop.xlane.xlu1 %1475 }
 0x2a1   : > { %2088 = vrsqrt.f32 %v1144_v45  ;;  %v1490_v10 = vmul.f32 %v1482_v3, %v1482_v3  ;;  %v1486_v18 = vmul.f32 0.0078125, %v1476_v63  ;;  %v1498_v7 = vsub.f32 %v3135_v30, %v1482_v3 }
 0x2a2   : > { %v1468_v2 = vpop.xlane.xlu0 %1467  ;;  %v3218_v30 = vrot.slane %v2935_v62, %v3162_v17 }
 0x2a3   : > { %v1494_v42 = vsub.f32 %v1486_v18, %v1490_v10  ;;  %v3174_v25 = vmul.f32 0.0078125, %v1468_v2 }
 0x2a4   : > { %v1462_v54 = vpop.xlane.xlu1 %1461 }
 0x2a5   : > { %v1502_v23 = vadd.f32 1e-05, %v1494_v42  ;;  %v3176_v14 = vmul.f32 0.0078125, %v1462_v54  ;;  %v1492_v38 = vmul.f32 %v3174_v25, %v3174_v25 }
 0x2a6   : > { %v1474_v16 = vpop.xlane.xlu0 %1473 }
 0x2a7   : > { %2090 = vrsqrt.f32 %v1502_v23  ;;  %v1489_v26 = vmul.f32 %v3176_v14, %v3176_v14  ;;  %v1485_v24 = vmul.f32 0.0078125, %v1474_v16 }
 0x2a8   : > { %v1480_v47 = vpop.xlane.xlu1 %1479 }
 0x2a9   : > { %v2087_v58 = vpop.eup %2086  ;;  %v1493_v29 = vsub.f32 %v1485_v24, %v1489_v26  ;;  %v1488_v22 = vmul.f32 0.0078125, %v1480_v47 }
 0x2aa   : > { %v1147_v33 = vmul.f32 %v2087_v58, %v1141_v11  ;;  %v1478_v13 = vpop.xlane.xlu0 %1477 }
 0x2ab   : > { %v2089_v36 = vpop.eup %2088  ;;  %v1501_v12 = vadd.f32 1e-05, %v1493_v29  ;;  %v1487_v39 = vmul.f32 0.0078125, %v1478_v13  ;;  %v1496_v8 = vsub.f32 %v1488_v22, %v1492_v38 }
 0x2ac   : > { %v1153_v40 = vmul.f32 %v1152_v15, %v1147_v33  ;;  %v1148_v43 = vmul.f32 %v2089_v36, %v1142_v4 }
 0x2ad   : > { %2092 = vrsqrt.f32 %v1501_v12  ;;  %v1495_v27 = vsub.f32 %v1487_v39, %v1491_v9  ;;  %v1504_v6 = vadd.f32 1e-05, %v1496_v8 }
 0x2ae   : > { %v1159_v56 = vadd.f32 %v1158_v20, %v1153_v40  ;;  %v1154_v60 = vmul.f32 %v1152_v15, %v1148_v43 }
 0x2af   : > { %v1503_v50 = vadd.f32 1e-05, %v1495_v27  ;;  %2094 = vrsqrt.f32 %v1504_v6 }
 0x2b0   : > { %1161 = vst [vmem:[%s484_s19] sm:$0xff] %v1159_v56  ;;  %v1160_v46 = vadd.f32 %v1158_v20, %v1154_v60 }
 0x2b1   : > { %v2091_v49 = vpop.eup %2090  ;;  %2096 = vrsqrt.f32 %v1503_v50 }
 0x2b2   : > { %1162 = vst [vmem:[%s484_s19 + $0x8] sm:$0xff] %v1160_v46  ;;  %v1510_v44 = vmul.f32 %v2091_v49, %v1498_v7 }
 0x2b3   : > { %2295 = shalt.err (!%p2292_p9)
}
 0x2b4   : > { %s2296_s16 = scalar_lea.hbm %s3204_s29, 256  ;;  %s2300_s4 = scalar_lea.hbm %s3421_s2, 512 }
 0x2b5   : > { %p2297_p4 = scmp.ne.s32.totalorder %s3204_s29, %s2296_s16  ;;  %p2301_p8 = scmp.lt.u32.totalorder %s3204_s29, %s3421_s2 }
 0x2b6   : > { %p2302_p2 = scmp.lt.u32.totalorder %s2300_s4, %s2296_s16  ;;  %p2304_p10 = scmp.lt.u32.totalorder %s2296_s16, %s3204_s29 }
 0x2b7   : > { %p2298_p11 = pnand %p2297_p4, %p3424_p1 }
 0x2b8   : > { %p2303_p6 = por %p2302_p2, %p2301_p8 }
 0x2b9   : > { %p2299_p3 = pneg %p2298_p11 }
 0x2ba   : > { %p2305_p5 = por %p2304_p10, %p2303_p6 }
 0x2bc   : > { %p2306_p0 = pnand %p2305_p5, %p2299_p3 }
 0x2be   : > { %2309 = shalt.err (!%p2306_p0)
}
 0x2bf   : > { %s2440_s17 = smov 128   ;;  %s2441_s14 = smov 8   ;;  %v1518_v62 = vmul.f32 %v3198_v35, %v1510_v44 }
 0x2c0   : > { %1971 = dma.vmem_to_hbm [thread:$0]  (%p3424_p1), %s3206_s11, 256, %s3204_s29, %s3222_s20, %s2440_s17, %s2440_s17, %s2441_s14  }
 0x2c1   : > { %s2310_s25 = scalar_lea.vmem %s3214_s9, 128  ;;  %s2442_s15 = smov [#allocation18]  }
 0x2c2   : > { %p2311_p12 = scmp.ne.s32.totalorder %s3214_s9, %s2310_s25  ;;  %s2314_s18 = sshll.u32 %s2442_s15, 4  ;;  %s2315_s18 = int_to_ptr.vmem [resolvable:$false] %s2314_s18 }
 0x2c3   : > { %s2316_s28 = scalar_lea.vmem %s2315_s18, 256  ;;  %p2317_p9 = scmp.lt.s32.totalorder %s3214_s9, %s2315_s18 }
 0x2c4   : > { %p2312_p13 = pnand %p2311_p12, %p3424_p1  ;;  %p2318_p4 = scmp.lt.s32.totalorder %s2316_s28, %s2310_s25 }
 0x2c6   : > { %p2313_p7 = pneg %p2312_p13  ;;  %p2319_p11 = por %p2318_p4, %p2317_p9 }
 0x2c8   : > { %p2320_p3 = pnand %p2319_p11, %p2313_p7 }
 0x2ca   : > { %2323 = shalt.err (!%p2320_p3)
}
 0x2cb   : > { %s2324_s11 = scalar_lea.hbm %s3212_s22, 128  ;;  %s2328_s16 = scalar_lea.hbm %s3423_s12, 256 }
 0x2cc   : > { %p2325_p8 = scmp.ne.s32.totalorder %s3212_s22, %s2324_s11  ;;  %p2329_p10 = scmp.lt.u32.totalorder %s3212_s22, %s3423_s12 }
 0x2cd   : > { %p2330_p5 = scmp.lt.u32.totalorder %s2328_s16, %s2324_s11  ;;  %p2332_p12 = scmp.lt.u32.totalorder %s2324_s11, %s3212_s22 }
 0x2ce   : > { %p2326_p2 = pnand %p2325_p8, %p3424_p1 }
 0x2cf   : > { %p2331_p0 = por %p2330_p5, %p2329_p10 }
 0x2d0   : > { %p2327_p6 = pneg %p2326_p2 }
 0x2d1   : > { %p2333_p13 = por %p2332_p12, %p2331_p0 }
 0x2d3   : > { %p2334_p7 = pnand %p2333_p13, %p2327_p6 }
 0x2d5   : > { %2337 = shalt.err (!%p2334_p7)
}
 0x2d6   : > { %1972 = dma.vmem_to_hbm [thread:$0]  (%p3424_p1), %s3214_s9, 128, %s3212_s22, %s3222_s20   ;;  %v1526_v17 = vadd.f32 %v3218_v30, %v1518_v62  ;;  %v1497_v51 = vsub.f32 %v3148_v32, %v3176_v14  ;;  %v2093_v37 = vpop.eup %2092  ;;  %v1500_v53 = vsub.f32 %v3145_v31, %v3174_v25  ;;  %v1499_v19 = vsub.f32 %v3138_v0, %v3178_v5 }
 0x2d7   : > { %s477_s4 = scalar_lea.vmem [#allocation15], %s1807_s21  ;;  %v2095_v57 = vpop.eup %2094  ;;  %s1862_s21 = sshll.u32 %s2532_s26, 9 }
 0x2d8   : > { %1530 = vst [vmem:[%s477_s4 + $0x8] sm:$0xff] %v1526_v17  ;;  %v1509_v55 = vmul.f32 %v2093_v37, %v1497_v51  ;;  %v1512_v61 = vmul.f32 %v2095_v57, %v1500_v53  ;;  %v2097_v21 = vpop.eup %2096  ;;  %s1557_s9 = sshll.u32 %s477_s4, 4  ;;  %s3425_s10 = sld [smem:[#allocation34_spill]]  ;;  %s3293_s9 = int_to_ptr.vmem [resolvable:$true] %s1557_s9 }
 0x2d9   : > { %v1511_v32 = vmul.f32 %v2097_v21, %v1499_v19  ;;  %s1534_s26 = scalar_lea.sflag [#allocation6], %s2769_s27  ;;  %s2338_s25 = scalar_lea.vmem %s3293_s9, 512 }
 0x2da   : > { %v1517_v59 = vmul.f32 %v3198_v35, %v1509_v55  ;;  %v1520_v1 = vmul.f32 %v3198_v35, %v1512_v61  ;;  %p2339_p9 = scmp.ne.s32.totalorder %s3293_s9, %s2338_s25  ;;  %s2443_s15 = smov [#allocation15]  }
 0x2db   : > { %v1519_v31 = vmul.f32 %v3198_v35, %v1511_v32  ;;  %s2342_s18 = sshll.u32 %s2443_s15, 4  ;;  %s2343_s18 = int_to_ptr.vmem [resolvable:$false] %s2342_s18 }
 0x2dc   : > { %v1525_v48 = vadd.f32 %v3218_v30, %v1517_v59  ;;  %v1528_v52 = vadd.f32 %v3218_v30, %v1520_v1  ;;  %p2340_p4 = pnand %p2339_p9, %p3424_p1  ;;  %s2344_s28 = scalar_lea.vmem %s2343_s18, 1024 }
 0x2dd   : > { %v1527_v0 = vadd.f32 %v3218_v30, %v1519_v31  ;;  %p2345_p3 = scmp.lt.s32.totalorder %s3293_s9, %s2343_s18  ;;  %p2346_p8 = scmp.lt.s32.totalorder %s2344_s28, %s2338_s25 }
 0x2de   : > { %1529 = vst [vmem:[%s477_s4] sm:$0xff] %v1525_v48  ;;  %1532 = vst [vmem:[%s477_s4 + $0x18] sm:$0xff] %v1528_v52  ;;  %s3291_s23 = scalar_lea.hbm %s3425_s10, %s1862_s21  ;;  %p2341_p11 = pneg %p2340_p4 }
 0x2df   : > { %1531 = vst [vmem:[%s477_s4 + $0x10] sm:$0xff] %v1527_v0  ;;  %p2347_p2 = por %p2346_p8, %p2345_p3 }
 0x2e1   : > { %p2348_p6 = pnand %p2347_p2, %p2341_p11 }
 0x2e3   : > { %2351 = shalt.err (!%p2348_p6)
}
 0x2e4   : > { %s2352_s11 = scalar_lea.hbm %s3291_s23, 512  ;;  %s2356_s16 = scalar_lea.hbm %s3425_s10, 1024 }
 0x2e5   : > { %p2353_p10 = scmp.ne.s32.totalorder %s3291_s23, %s2352_s11  ;;  %p2357_p12 = scmp.lt.u32.totalorder %s3291_s23, %s3425_s10 }
 0x2e6   : > { %p2358_p13 = scmp.lt.u32.totalorder %s2356_s16, %s2352_s11  ;;  %p2360_p9 = scmp.lt.u32.totalorder %s2352_s11, %s3291_s23 }
 0x2e7   : > { %p2354_p5 = pnand %p2353_p10, %p3424_p1 }
 0x2e8   : > { %p2359_p7 = por %p2358_p13, %p2357_p12 }
 0x2e9   : > { %p2355_p0 = pneg %p2354_p5 }
 0x2ea   : > { %p2361_p4 = por %p2360_p9, %p2359_p7 }
 0x2ec   : > { %p2362_p11 = pnand %p2361_p4, %p2355_p0 }
 0x2ee   : > { %2365 = shalt.err (!%p2362_p11)
}
 0x2ef   : > { %1970 = dma.vmem_to_hbm [thread:$0]  (%p3424_p1), %s3293_s9, 512, %s3291_s23, %s1534_s26, %s2440_s17, %s2440_s17, %s2441_s14  }
 0x2f0 PF: > { %s3426_s4 = sld [smem:[#allocation26_spill]]  ;;  %s3427_s21 = sld [smem:[#allocation31_spill]] }
 0x2f1   : > { %p3429_p8 = scmp.ge.s32.totalorder %s2422_s0, 2 }
 0x2f6   : > { %s1601_s22 = sand.u32 1, %s3426_s4   ;;  %p3428_p3 = scmp.ne.s32.totalorder %s3427_s21, 0 }
 0x2f7   : > { %s1602_s20 = scalar_lea.sflag [#allocation6], %s1601_s22 }
 0x2f8   : > { %p1997_p2 = pnand %p3429_p8, %p3428_p3 }
 0x2fa   : > { %2401 = dma.done.wait (!%p1997_p2), %s1602_s20, 512  }
 0x2fb   : > { %2403 = vsyncadd (!%p1997_p2), %s1602_s20, 4294966784  ;;  %s3430_s30 = sadd.s32 4294967294, %s2422_s0  }
 0x2fc   : > { %s1610_s25 = sand.u32 1, %s3430_s30  }
 0x2fd   : > { %s1611_s15 = scalar_lea.sflag [#allocation17], %s1610_s25 }
 0x2fe   : > { %2405 = dma.done.wait (!%p1997_p2), %s1611_s15, 384  }
 0x2ff   : > { %2407 = vsyncadd (!%p1997_p2), %s1611_s15, 4294966912  ;;  %s3431_s0 = sld [smem:[#allocation28_spill]]  ;;  %s3432_s27 = sld [smem:[#allocation27_spill]] }
 0x300   : > { %s3433_s25 = sld [smem:[#allocation29_spill]]  ;;  %s3434_s23 = smov %s2414_s24 }
 0x305   : > { %p36_p1 = scmp.ge.s32.totalorder %s3431_s0, 4   ;;  %s3435_s24 = smov %s3432_s27 }
 0x307   :  { %38 = sbr.rel (!%p36_p1) target bundleno = 24 (0x18), region = 163 }
 0x30e   :  { %1625 = vsyncpa [#allocation5], 1 }
 0x30f   :  { %1627 = vsyncpa [#allocation5 + $0x1], 1 }
 0x310   :  { %1628 = vsyncpa [#allocation8], 1 }
 0x311   :  { %1630 = vsyncpa [#allocation8 + $0x1], 1 }
 0x312   :  { %1631 = vsyncpa [#allocation11], 1 }
 0x313   :  { %1632 = vsyncpa [#allocation14], 1 }
 0x314   :  { %1633 = vsyncpa [#allocation6], 1 }
 0x315   :  { %1635 = vsyncpa [#allocation6 + $0x1], 1 }
 0x316   :  { %1636 = vsyncpa [#allocation17], 1 }
 0x317   :  { %1638 = vsyncpa [#allocation17 + $0x1], 1 }

</bundles_post_ra>
